<compile_context>
chip_gen: v6e
topology: v6e:2x2x1
jax: 0.10.0
libtpu: 0.0.40
codegen_flags: <defaults>
</compile_context>

<pallas_src>
import jax
import jax.numpy as jnp
from jax.experimental import pallas as pl
from jax.experimental.pallas import tpu as pltpu

FEAT = 512            # per-image backbone feature width (resnet34 pooled output)
HID = 2 * FEAT        # 1024 after concatenating the two image features
HEAD = 7              # 4 (quaternion) + 3 (translation)
HEAD_PAD = 128        # lane-dense padded head width (cols 0:4 rot, 4:7 trans)
BN_EPS = 1e-5
ROW_TILE_MAX = 256    # batch tile for the grid (safe on v5e 16 MiB scoped VMEM)


def _round_up(x, m):
    return ((x + m - 1) // m) * m


def _pose_head_kernel(cat_ref, w_i_ref, b_i_ref, w_h_ref, b_h_ref, out_ref):
    # fc_i with eval-mode BatchNorm pre-folded into w_i / b_i, then ReLU.
    fc1 = (jnp.dot(cat_ref[...], w_i_ref[...],
                   preferred_element_type=jnp.float32)
           + b_i_ref[...])                                      # (tile, 1024) f32
    # Dropout(0.5) is the identity in eval mode.
    act = jnp.maximum(fc1, 0.0).astype(w_h_ref.dtype)           # bf16 MXU path
    # Fused rot|trans head -> single lane-dense (tile, 128) unmasked store.
    out_ref[...] = (jnp.dot(act, w_h_ref[...],
                            preferred_element_type=jnp.float32)
                    + b_h_ref[...])


def prep_kernel_params(params, dtype=jnp.bfloat16):
    """One-time (model-load) prep: fold eval-mode BN into fc_i, fuse + pad the
    rot/trans heads into a lane-dense slab, cast big weights to bf16."""
    scale = params["gamma"] / jnp.sqrt(params["rvar"] + BN_EPS)        # (1, HID)
    w_i = (params["w_i"] * scale).astype(dtype)                        # (HID, HID)
    b_i = (params["b_i"] - params["rmean"]) * scale + params["beta"]   # (1, HID) f32

    w_h = jnp.zeros((HID, HEAD_PAD), jnp.float32)
    w_h = w_h.at[:, :4].set(params["w_r"]).at[:, 4:HEAD].set(params["w_t"])
    w_h = w_h.astype(dtype)                                            # (HID, 128)
    b_h = jnp.zeros((1, HEAD_PAD), jnp.float32)
    b_h = b_h.at[:, :4].set(params["b_r"]).at[:, 4:HEAD].set(params["b_t"])
    return dict(w_i=w_i, b_i=b_i, w_h=w_h, b_h=b_h)


@jax.jit
def nnnet_forward(im1, im2, bb_params, head_params):
    """im1, im2: (N, C, H, W) float32 -> (rot (N,4), trans (N,3)).

    `head_params` must come from prep_kernel_params (done once at load time).
    """
    N, C, H, W = im1.shape

    # TODO(synk): the real module uses a pretrained resnet34 backbone whose
    # definition/weights are external to this module's source; it is replaced
    # by a deterministic stand-in (global average pool + linear C->512),
    # computed here in the XLA wrapper so the images never enter kernel VMEM.
    p1 = im1.reshape(N, C, H * W).mean(-1)                      # (N, C)
    p2 = im2.reshape(N, C, H * W).mean(-1)                      # (N, C)
    f1 = p1 @ bb_params["w_bb"] + bb_params["b_bb"]             # (N, 512)
    f2 = p2 @ bb_params["w_bb"] + bb_params["b_bb"]             # (N, 512)
    cat = jnp.concatenate([f1, f2], axis=1).astype(jnp.bfloat16)  # (N, 1024)

    # Pad the batch to a full sublane tile (16 rows for bf16) so MXU passes and
    # stores are unmasked; large N gets a 256-row parallel grid axis.
    row_tile = ROW_TILE_MAX if N > ROW_TILE_MAX else _round_up(max(N, 1), 16)
    n_pad = _round_up(N, row_tile)
    if n_pad != N:
        cat = jnp.pad(cat, ((0, n_pad - N), (0, 0)))

    w_i = head_params["w_i"]
    b_i = head_params["b_i"]
    w_h = head_params["w_h"]
    b_h = head_params["b_h"]

    bytes_accessed = int(cat.size * 2 + w_i.size * 2 + b_i.size * 4
                         + w_h.size * 2 + b_h.size * 4 + n_pad * HEAD_PAD * 4)

    out = pl.pallas_call(
        _pose_head_kernel,
        out_shape=jax.ShapeDtypeStruct((n_pad, HEAD_PAD), jnp.float32),
        grid=(n_pad // row_tile,),
        in_specs=[
            pl.BlockSpec((row_tile, HID), lambda i: (i, 0)),   # streamed per tile
            pl.BlockSpec((HID, HID), lambda i: (0, 0)),        # VMEM-resident
            pl.BlockSpec((1, HID), lambda i: (0, 0)),
            pl.BlockSpec((HID, HEAD_PAD), lambda i: (0, 0)),
            pl.BlockSpec((1, HEAD_PAD), lambda i: (0, 0)),
        ],
        out_specs=pl.BlockSpec((row_tile, HEAD_PAD), lambda i: (i, 0)),
        compiler_params=pltpu.CompilerParams(
            dimension_semantics=("parallel",)),
        cost_estimate=pl.CostEstimate(
            flops=2 * n_pad * HID * HID + 2 * n_pad * HID * HEAD_PAD,
            transcendentals=0,
            bytes_accessed=bytes_accessed),
    )(cat, w_i, b_i, w_h, b_h)

    rot = out[:N, :4]
    trans = out[:N, 4:HEAD]
    return rot, trans


def nnnet_reference(im1, im2, params):
    """Pure-JAX f32 reference for correctness checking."""
    N, C = im1.shape[0], im1.shape[1]
    p1 = im1.reshape(N, C, -1).mean(-1)
    p2 = im2.reshape(N, C, -1).mean(-1)
    f1 = p1 @ params["w_bb"] + params["b_bb"]
    f2 = p2 @ params["w_bb"] + params["b_bb"]
    cat = jnp.concatenate([f1, f2], axis=1)
    fc1 = cat @ params["w_i"] + params["b_i"]
    bn = ((fc1 - params["rmean"]) / jnp.sqrt(params["rvar"] + BN_EPS)
          * params["gamma"] + params["beta"])
    act = jnp.maximum(bn, 0.0)
    rot = act @ params["w_r"] + params["b_r"]
    trans = act @ params["w_t"] + params["b_t"]
    return rot, trans


def init_params(key):
    keys = jax.random.split(key, 7)

    def xavier(k, fan_in, fan_out):            # nn.init.xavier_normal_
        std = (2.0 / (fan_in + fan_out)) ** 0.5
        return std * jax.random.normal(k, (fan_in, fan_out), jnp.float32)

    def bias(k, fan_in, n):                    # torch Linear default bias init
        bound = 1.0 / (fan_in ** 0.5)
        return jax.random.uniform(k, (1, n), jnp.float32, -bound, bound)

    return dict(
        w_bb=xavier(keys[0], 3, FEAT),
        b_bb=jnp.zeros((1, FEAT), jnp.float32),
        w_i=xavier(keys[1], HID, HID),
        b_i=bias(keys[2], HID, HID),
        gamma=jnp.ones((1, HID), jnp.float32),     # BatchNorm1d defaults
        beta=jnp.zeros((1, HID), jnp.float32),
        rmean=jnp.zeros((1, HID), jnp.float32),
        rvar=jnp.ones((1, HID), jnp.float32),
        w_r=xavier(keys[3], HID, 4),
        b_r=bias(keys[4], HID, 4),
        w_t=xavier(keys[5], HID, 3),
        b_t=bias(keys[6], HID, 3),
    )


if __name__ == "__main__":
    key = jax.random.PRNGKey(0)
    kp, k1, k2 = jax.random.split(key, 3)
    params = init_params(kp)

    # Model-load-time prep (done exactly once, NOT per forward call).
    bb_params = dict(w_bb=params["w_bb"], b_bb=params["b_bb"])
    head_params = jax.tree_util.tree_map(jax.block_until_ready,
                                         prep_kernel_params(params))

    im1 = jax.random.normal(k1, (2, 3, 16, 16), jnp.float32)
    im2 = jax.random.normal(k2, (2, 3, 16, 16), jnp.float32)

    rot, trans = nnnet_forward(im1, im2, bb_params, head_params)
    jax.block_until_ready((rot, trans))

    assert rot.shape == (2, 4) and trans.shape == (2, 3)
    rot_ref, trans_ref = nnnet_reference(im1, im2, params)
    # bf16 weight storage + folded BN introduce ~1e-3-scale relative deviation
    # vs. the pure-f32 reference; 5e-3 keeps a comfortable margin.
    assert jnp.allclose(rot, rot_ref, atol=5e-3, rtol=5e-3)
    assert jnp.allclose(trans, trans_ref, atol=5e-3, rtol=5e-3)

    print("KERNEL_OK")
</pallas_src>

<mosaic_0001>
module attributes {stable_mosaic.version = 11 : i64} {
  func.func @_pose_head_kernel(%arg0: i32, %arg1: memref<16x1024xbf16, #tpu.memory_space<vmem>>, %arg2: memref<1024x1024xbf16, #tpu.memory_space<vmem>>, %arg3: memref<1x1024xf32, #tpu.memory_space<vmem>>, %arg4: memref<1024x128xbf16, #tpu.memory_space<vmem>>, %arg5: memref<1x128xf32, #tpu.memory_space<vmem>>, %arg6: memref<16x128xf32, #tpu.memory_space<vmem>>) attributes {dimension_semantics = [#tpu.dimension_semantics<parallel>], iteration_bounds = array<i64: 1>, scalar_prefetch = 0 : i64, scratch_operands = 0 : i64, tpu.core_type = #tpu.core_type<tc>, window_params = [{transform_indices = @transform_0, window_bounds = array<i64: 16, 1024>}, {pipeline_mode = #tpu.pipeline_mode<synchronous>, transform_indices = @transform_1, window_bounds = array<i64: 1024, 1024>}, {pipeline_mode = #tpu.pipeline_mode<synchronous>, transform_indices = @transform_2, window_bounds = array<i64: 1, 1024>}, {pipeline_mode = #tpu.pipeline_mode<synchronous>, transform_indices = @transform_3, window_bounds = array<i64: 1024, 128>}, {pipeline_mode = #tpu.pipeline_mode<synchronous>, transform_indices = @transform_4, window_bounds = array<i64: 1, 128>}, {transform_indices = @transform_5, window_bounds = array<i64: 16, 128>}]} {
    %c0 = arith.constant 0 : index
    %c0_0 = arith.constant 0 : index
    %0 = vector.load %arg1[%c0, %c0_0] : memref<16x1024xbf16, #tpu.memory_space<vmem>>, vector<16x1024xbf16>
    %c0_1 = arith.constant 0 : index
    %c0_2 = arith.constant 0 : index
    %1 = vector.load %arg2[%c0_1, %c0_2] : memref<1024x1024xbf16, #tpu.memory_space<vmem>>, vector<1024x1024xbf16>
    %cst = arith.constant dense<0.000000e+00> : vector<16x1024xf32>
    %2 = tpu.matmul %0, %1, %cst {dimension_numbers = #tpu.dot_dimension_numbers<[1], [0], [0], [1], [0, 0, 1, 1], [], []>} : vector<16x1024xbf16>, vector<1024x1024xbf16>, vector<16x1024xf32> -> vector<16x1024xf32>
    %c0_3 = arith.constant 0 : index
    %c0_4 = arith.constant 0 : index
    %3 = vector.load %arg3[%c0_3, %c0_4] : memref<1x1024xf32, #tpu.memory_space<vmem>>, vector<1x1024xf32>
    %4 = vector.broadcast %3 : vector<1x1024xf32> to vector<16x1024xf32>
    %5 = arith.addf %2, %4 : vector<16x1024xf32>
    %cst_5 = arith.constant 0.000000e+00 : f32
    %6 = vector.broadcast %cst_5 : f32 to vector<16x1024xf32>
    %7 = arith.maximumf %5, %6 : vector<16x1024xf32>
    %8 = arith.truncf %7 : vector<16x1024xf32> to vector<16x1024xbf16>
    %c0_6 = arith.constant 0 : index
    %c0_7 = arith.constant 0 : index
    %9 = vector.load %arg4[%c0_6, %c0_7] : memref<1024x128xbf16, #tpu.memory_space<vmem>>, vector<1024x128xbf16>
    %cst_8 = arith.constant dense<0.000000e+00> : vector<16x128xf32>
    %10 = tpu.matmul %8, %9, %cst_8 {dimension_numbers = #tpu.dot_dimension_numbers<[1], [0], [0], [1], [0, 0, 1, 1], [], []>} : vector<16x1024xbf16>, vector<1024x128xbf16>, vector<16x128xf32> -> vector<16x128xf32>
    %c0_9 = arith.constant 0 : index
    %c0_10 = arith.constant 0 : index
    %11 = vector.load %arg5[%c0_9, %c0_10] : memref<1x128xf32, #tpu.memory_space<vmem>>, vector<1x128xf32>
    %12 = vector.broadcast %11 : vector<1x128xf32> to vector<16x128xf32>
    %13 = arith.addf %10, %12 : vector<16x128xf32>
    %c0_11 = arith.constant 0 : index
    %c0_12 = arith.constant 0 : index
    %14 = vector.load %arg6[%c0_11, %c0_12] : memref<16x128xf32, #tpu.memory_space<vmem>>, vector<16x128xf32>
    tpu.vector_store %arg6[%c0_11, %c0_12], %13 {strides = array<i32>} : memref<16x128xf32, #tpu.memory_space<vmem>>, vector<16x128xf32>,
    return
  }
  func.func @transform_0(%arg0: i32) -> (i32, i32) {
    %c0_i32 = arith.constant 0 : i32
    %c0_i32_0 = arith.constant 0 : i32
    return %arg0, %c0_i32 : i32, i32
  }
  func.func @transform_1(%arg0: i32) -> (i32, i32) {
    %c0_i32 = arith.constant 0 : i32
    %c0_i32_0 = arith.constant 0 : i32
    %c0_i32_1 = arith.constant 0 : i32
    return %c0_i32, %c0_i32_0 : i32, i32
  }
  func.func @transform_2(%arg0: i32) -> (i32, i32) {
    %c0_i32 = arith.constant 0 : i32
    %c0_i32_0 = arith.constant 0 : i32
    %c0_i32_1 = arith.constant 0 : i32
    return %c0_i32, %c0_i32_0 : i32, i32
  }
  func.func @transform_3(%arg0: i32) -> (i32, i32) {
    %c0_i32 = arith.constant 0 : i32
    %c0_i32_0 = arith.constant 0 : i32
    %c0_i32_1 = arith.constant 0 : i32
    return %c0_i32, %c0_i32_0 : i32, i32
  }
  func.func @transform_4(%arg0: i32) -> (i32, i32) {
    %c0_i32 = arith.constant 0 : i32
    %c0_i32_0 = arith.constant 0 : i32
    %c0_i32_1 = arith.constant 0 : i32
    return %c0_i32, %c0_i32_0 : i32, i32
  }
  func.func @transform_5(%arg0: i32) -> (i32, i32) {
    %c0_i32 = arith.constant 0 : i32
    %c0_i32_0 = arith.constant 0 : i32
    return %arg0, %c0_i32 : i32, i32
  }
}

</mosaic_0001>

<bundles_post_ra>
// kernel: nnnet_forward.1
= control target key start
LH: loop header
LB: loop body
LE: loop exit
PB: predicated region body
PF: predicated region fallthrough
CT: control target
= control target key end

     0   :  { %10 = vsyncpa [#allocation3], 0  ;;  %s5727_s0 = inlined_call_operand.vmem [shape: bf16[16,1024], index: 0, kind: input, shape index: {}]   ;;  %s5728_s1 = inlined_call_operand.hbm [shape: bf16[1024,1024], index: 1, kind: input, shape index: {}]   ;;  %s5729_s2 = inlined_call_operand.hbm [shape: f32[1,1024], index: 2, kind: input, shape index: {}]   ;;  %s5730_s3 = inlined_call_operand.hbm [shape: bf16[1024,128], index: 3, kind: input, shape index: {}]   ;;  %s5731_s4 = inlined_call_operand.hbm [shape: f32[1,128], index: 4, kind: input, shape index: {}]   ;;  %s5732_s5 = inlined_call_operand.vmem [shape: f32[16,128], index: 5, kind: output, shape index: {}]  }
   0x1   :  { %11 = vsyncpa [#allocation5], 0 }
   0x2   :  { %12 = vsyncpa [#allocation8], 0  ;;  %s5469_s18 = smov [#allocation4]   ;;  %s5470_s20 = smov [#allocation2]  }
   0x3   :  { %s33_s19 = sshll.u32 %s5469_s18, 4  ;;  %s20_s21 = sshll.u32 %s5470_s20, 4  ;;  %s34_s19 = int_to_ptr.vmem [resolvable:$true] %s33_s19  ;;  %s21_s21 = int_to_ptr.vmem [resolvable:$true] %s20_s21 }
   0x4   :  { %s5391_s22 = scalar_lea.vmem %s34_s19, 128  ;;  %p5396_p1 = scmp.lt.s32.totalorder %s34_s19, %s34_s19 }
   0x5   :  { %p5392_p0 = scmp.ne.s32.totalorder %s34_s19, %s5391_s22  ;;  %p5397_p2 = scmp.lt.s32.totalorder %s5391_s22, %s5391_s22 }
   0x7   :  { %p5398_p3 = por %p5397_p2, %p5396_p1 }
   0x9   :  { %p5399_p4 = pnand %p5398_p3, %p5392_p0 }
   0xb   :  { %5402 = shalt.err (!%p5399_p4)
}
   0xc   :  { %36 = dma.hbm_to_vmem [thread:$0]  %s5729_s2, 128, %s34_s19, [#allocation5]  }
   0xd   :  { %s5411_s25 = scalar_lea.vmem %s21_s21, 65536  ;;  %p5416_p6 = scmp.lt.s32.totalorder %s21_s21, %s21_s21 }
   0xe   :  { %p5412_p5 = scmp.ne.s32.totalorder %s21_s21, %s5411_s25  ;;  %p5417_p7 = scmp.lt.s32.totalorder %s5411_s25, %s5411_s25 }
  0x10   :  { %p5418_p8 = por %p5417_p7, %p5416_p6 }
  0x12   :  { %p5419_p9 = pnand %p5418_p8, %p5412_p5 }
  0x14   :  { %5422 = shalt.err (!%p5419_p9)
}
  0x15   :  { %s5471_s26 = smov 512   ;;  %s5472_s27 = smov 32  }
  0x16   :  { %26 = dma.hbm_to_vmem [thread:$0]  %s5728_s1, 65536, %s21_s21, [#allocation3], %s5471_s26, %s5471_s26, %s5472_s27  }
  0x17   :  { %s5473_s30 = smov [#allocation6]  }
  0x18   :  { %s42_s6 = sshll.u32 %s5473_s30, 4  ;;  %s43_s6 = int_to_ptr.vmem [resolvable:$true] %s42_s6 }
  0x19   :  { %s5431_s7 = scalar_lea.vmem %s43_s6, 8192  ;;  %p5436_p11 = scmp.lt.s32.totalorder %s43_s6, %s43_s6 }
  0x1a   :  { %p5432_p10 = scmp.ne.s32.totalorder %s43_s6, %s5431_s7  ;;  %p5437_p12 = scmp.lt.s32.totalorder %s5431_s7, %s5431_s7 }
  0x1c   :  { %p5438_p13 = por %p5437_p12, %p5436_p11 }
  0x1e   :  { %p5439_p0 = pnand %p5438_p13, %p5432_p10 }
  0x20   :  { %5442 = shalt.err (!%p5439_p0)
}
  0x21   :  { %s5474_s2 = smov 64   ;;  %s5475_s8 = smov 4  }
  0x22   :  { %48 = dma.hbm_to_vmem [thread:$0]  %s5730_s3, 8192, %s43_s6, [#allocation5], %s5474_s2, %s5474_s2, %s5475_s8  }
  0x23   :  { %s5476_s11 = smov [#allocation7]  }
  0x24   :  { %s55_s12 = sshll.u32 %s5476_s11, 4  ;;  %s56_s12 = int_to_ptr.vmem [resolvable:$true] %s55_s12 }
  0x25   :  { %s5451_s1 = scalar_lea.vmem %s56_s12, 16  ;;  %s5455_s13 = scalar_lea.vmem %s56_s12, 32 }
  0x26   :  { %p5452_p1 = scmp.ne.s32.totalorder %s56_s12, %s5451_s1  ;;  %p5456_p2 = scmp.lt.s32.totalorder %s56_s12, %s56_s12 }
  0x27   :  { %p5457_p3 = scmp.lt.s32.totalorder %s5455_s13, %s5451_s1 }
  0x29   :  { %p5458_p4 = por %p5457_p3, %p5456_p2 }
  0x2b   :  { %p5459_p5 = pnand %p5458_p4, %p5452_p1 }
  0x2d   :  { %5462 = shalt.err (!%p5459_p5)
}
  0x2e   :  { %58 = dma.hbm_to_vmem [thread:$0]  %s5731_s4, 16, %s56_s12, [#allocation8]  }
  0x2f   :  { %5463 = dma.done.wait [#allocation3], 65536  }
  0x30   :  { %5464 = vsyncadd [#allocation3], 4294901760 }
  0x31   :  { %5465 = dma.done.wait [#allocation5], 8320  }
  0x32   :  { %5466 = vsyncadd [#allocation5], 4294958976 }
  0x33   :  { %5467 = dma.done.wait [#allocation8], 16  }
  0x34   :  { %5468 = vsyncadd [#allocation8], 4294967280  ;;  %v136_v0 = vld [vmem:[#allocation2 + $0x1c0] sm:$0xff]  ;;  %v5536_v59 = vld [vmem:[%s5727_s0 + $0x8] sm:$0xff] }
  0x35   :  { %v140_v1 = vld [vmem:[#allocation2 + $0x1e0] sm:$0xff]  ;;  %v5541_v60 = vld [vmem:[%s5727_s0 + $0x28] sm:$0xff] }
  0x36   :  { %v264_v2 = vld [vmem:[#allocation2 + $0x5c0] sm:$0xff]  ;;  %v4703_v3 = vcombine.high %v136_v0, %v140_v1  ;;  %v4702_v5 = vcombine.low %v136_v0, %v140_v1  ;;  %v5545_v63 = vcombine.high %v5536_v59, %v5541_v60 }
  0x37   :  { %v268_v4 = vld [vmem:[#allocation2 + $0x5e0] sm:$0xff] }
  0x38   :  { %v128_v6 = vld [vmem:[#allocation2 + $0x180] sm:$0xff]  ;;  %v4831_v8 = vcombine.high %v264_v2, %v268_v4  ;;  %v4830_v9 = vcombine.low %v264_v2, %v268_v4  ;;  %3234 = vmatprep.subr.bf16.mxu0 %v4703_v3  ;;  %3309 = vmatprep.mubr.bf16.mxu1 %v5545_v63 }
  0x39   :  { %v132_v7 = vld [vmem:[#allocation2 + $0x1a0] sm:$0xff]  ;;  %3235 = vmatpush1.bf16.msra.mxu0 %v4702_v5 }
  0x3a   :  { %v4695_v10 = vcombine.high %v128_v6, %v132_v7  ;;  %v256_v11 = vld [vmem:[#allocation2 + $0x580] sm:$0xff]  ;;  %3277 = vmatprep.subr.bf16.mxu1 %v4831_v8  ;;  %v4694_v18 = vcombine.low %v128_v6, %v132_v7 }
  0x3b   :  { %v260_v12 = vld [vmem:[#allocation2 + $0x5a0] sm:$0xff]  ;;  %3278 = vmatpush1.bf16.msra.mxu1 %v4830_v9 }
  0x3c   :  { %v120_v13 = vld [vmem:[#allocation2 + $0x140] sm:$0xff]  ;;  %v4823_v14 = vcombine.high %v256_v11, %v260_v12  ;;  %3236 = vmatprep.subr.bf16.mxu0 %v4695_v10  ;;  %v4822_v19 = vcombine.low %v256_v11, %v260_v12 }
  0x3d   :  { %v124_v15 = vld [vmem:[#allocation2 + $0x160] sm:$0xff]  ;;  %3237 = vmatpush1.bf16.msra.mxu0 %v4694_v18 }
  0x3e   :  { %v248_v16 = vld [vmem:[#allocation2 + $0x540] sm:$0xff]  ;;  %v4687_v20 = vcombine.high %v120_v13, %v124_v15  ;;  %3279 = vmatprep.subr.bf16.mxu1 %v4823_v14  ;;  %v4686_v26 = vcombine.low %v120_v13, %v124_v15 }
  0x3f   :  { %v252_v17 = vld [vmem:[#allocation2 + $0x560] sm:$0xff]  ;;  %3280 = vmatpush1.bf16.msra.mxu1 %v4822_v19 }
  0x40   :  { %v4815_v21 = vcombine.high %v248_v16, %v252_v17  ;;  %v112_v22 = vld [vmem:[#allocation2 + $0x100] sm:$0xff]  ;;  %3238 = vmatprep.subr.bf16.mxu0 %v4687_v20  ;;  %v4814_v27 = vcombine.low %v248_v16, %v252_v17 }
  0x41   :  { %v116_v23 = vld [vmem:[#allocation2 + $0x120] sm:$0xff]  ;;  %3239 = vmatpush1.bf16.msra.mxu0 %v4686_v26 }
  0x42   :  { %v240_v24 = vld [vmem:[#allocation2 + $0x500] sm:$0xff]  ;;  %v4679_v28 = vcombine.high %v112_v22, %v116_v23  ;;  %3281 = vmatprep.subr.bf16.mxu1 %v4815_v21  ;;  %v4678_v34 = vcombine.low %v112_v22, %v116_v23 }
  0x43   :  { %v244_v25 = vld [vmem:[#allocation2 + $0x520] sm:$0xff]  ;;  %3282 = vmatpush1.bf16.msra.mxu1 %v4814_v27 }
  0x44   :  { %v4807_v29 = vcombine.high %v240_v24, %v244_v25  ;;  %v104_v30 = vld [vmem:[#allocation2 + $0xc0] sm:$0xff]  ;;  %3240 = vmatprep.subr.bf16.mxu0 %v4679_v28  ;;  %v4806_v35 = vcombine.low %v240_v24, %v244_v25 }
  0x45   :  { %v108_v31 = vld [vmem:[#allocation2 + $0xe0] sm:$0xff]  ;;  %3241 = vmatpush1.bf16.msra.mxu0 %v4678_v34 }
  0x46   :  { %v232_v32 = vld [vmem:[#allocation2 + $0x4c0] sm:$0xff]  ;;  %v4671_v36 = vcombine.high %v104_v30, %v108_v31  ;;  %3283 = vmatprep.subr.bf16.mxu1 %v4807_v29  ;;  %v4670_v42 = vcombine.low %v104_v30, %v108_v31 }
  0x47   :  { %v236_v33 = vld [vmem:[#allocation2 + $0x4e0] sm:$0xff]  ;;  %3284 = vmatpush1.bf16.msra.mxu1 %v4806_v35 }
  0x48   :  { %v4799_v37 = vcombine.high %v232_v32, %v236_v33  ;;  %v96_v38 = vld [vmem:[#allocation2 + $0x80] sm:$0xff]  ;;  %3242 = vmatprep.subr.bf16.mxu0 %v4671_v36  ;;  %v4798_v43 = vcombine.low %v232_v32, %v236_v33 }
  0x49   :  { %v100_v39 = vld [vmem:[#allocation2 + $0xa0] sm:$0xff]  ;;  %3243 = vmatpush1.bf16.msra.mxu0 %v4670_v42 }
  0x4a   :  { %v224_v40 = vld [vmem:[#allocation2 + $0x480] sm:$0xff]  ;;  %v4663_v44 = vcombine.high %v96_v38, %v100_v39  ;;  %3285 = vmatprep.subr.bf16.mxu1 %v4799_v37  ;;  %v4662_v50 = vcombine.low %v96_v38, %v100_v39 }
  0x4b   :  { %v228_v41 = vld [vmem:[#allocation2 + $0x4a0] sm:$0xff]  ;;  %3286 = vmatpush1.bf16.msra.mxu1 %v4798_v43 }
  0x4c   :  { %v4791_v45 = vcombine.high %v224_v40, %v228_v41  ;;  %v88_v46 = vld [vmem:[#allocation2 + $0x40] sm:$0xff]  ;;  %3244 = vmatprep.subr.bf16.mxu0 %v4663_v44  ;;  %v4790_v51 = vcombine.low %v224_v40, %v228_v41 }
  0x4d   :  { %v92_v47 = vld [vmem:[#allocation2 + $0x60] sm:$0xff]  ;;  %3245 = vmatpush1.bf16.msra.mxu0 %v4662_v50 }
  0x4e   :  { %v216_v48 = vld [vmem:[#allocation2 + $0x440] sm:$0xff]  ;;  %v4655_v52 = vcombine.high %v88_v46, %v92_v47  ;;  %3287 = vmatprep.subr.bf16.mxu1 %v4791_v45  ;;  %v4654_v0 = vcombine.low %v88_v46, %v92_v47 }
  0x4f   :  { %v220_v49 = vld [vmem:[#allocation2 + $0x460] sm:$0xff]  ;;  %3288 = vmatpush1.bf16.msra.mxu1 %v4790_v51 }
  0x50   :  { %v80_v53 = vld [vmem:[#allocation2] sm:$0xff]  ;;  %v4783_v56 = vcombine.high %v216_v48, %v220_v49  ;;  %3246 = vmatprep.subr.bf16.mxu0 %v4655_v52  ;;  %v4782_v1 = vcombine.low %v216_v48, %v220_v49 }
  0x51   :  { %v5522_v54 = vld [vmem:[%s5727_s0] sm:$0xff]  ;;  %3247 = vmatpush1.bf16.msra.mxu0 %v4654_v0 }
  0x52   :  { %v5527_v55 = vld [vmem:[%s5727_s0 + $0x20] sm:$0xff]  ;;  %3289 = vmatprep.subr.bf16.mxu1 %v4783_v56 }
  0x53   :  { %v84_v57 = vld [vmem:[#allocation2 + $0x20] sm:$0xff]  ;;  %v5531_v58 = vcombine.high %v5522_v54, %v5527_v55  ;;  %3290 = vmatpush1.bf16.msra.mxu1 %v4782_v1 }
  0x54   :  { %v208_v61 = vld [vmem:[#allocation2 + $0x400] sm:$0xff]  ;;  %v4647_v2 = vcombine.high %v80_v53, %v84_v57  ;;  %v4646_v8 = vcombine.low %v80_v53, %v84_v57 }
  0x55   :  { %v212_v62 = vld [vmem:[#allocation2 + $0x420] sm:$0xff]  ;;  %3266 = vmatprep.mubr.bf16.mxu0 %v5531_v58 }
  0x56   :  { %v4775_v3 = vcombine.high %v208_v61, %v212_v62  ;;  %v200_v4 = vld [vmem:[#allocation2 + $0x3c0] sm:$0xff]  ;;  %3248 = vmatprep.subr.bf16.mxu0 %v4647_v2  ;;  %v4774_v9 = vcombine.low %v208_v61, %v212_v62 }
  0x57   :  { %v204_v5 = vld [vmem:[#allocation2 + $0x3e0] sm:$0xff]  ;;  %3249 = vmatpush1.bf16.msra.mxu0 %v4646_v8 }
  0x58   :  { %v328_v6 = vld [vmem:[#allocation2 + $0x7c0] sm:$0xff]  ;;  %v4767_v10 = vcombine.high %v200_v4, %v204_v5  ;;  %3291 = vmatprep.subr.bf16.mxu1 %v4775_v3  ;;  %v4766_v16 = vcombine.low %v200_v4, %v204_v5 }
  0x59   :  { %v332_v7 = vld [vmem:[#allocation2 + $0x7e0] sm:$0xff]  ;;  %3292 = vmatpush1.bf16.msra.mxu1 %v4774_v9 }
  0x5a   :  { %v4895_v11 = vcombine.high %v328_v6, %v332_v7  ;;  %v192_v12 = vld [vmem:[#allocation2 + $0x380] sm:$0xff]  ;;  %3250 = vmatprep.subr.bf16.mxu0 %v4767_v10  ;;  %v4894_v17 = vcombine.low %v328_v6, %v332_v7 }
  0x5b   :  { %v196_v13 = vld [vmem:[#allocation2 + $0x3a0] sm:$0xff]  ;;  %3251 = vmatpush2.bf16.msra.mxu0 %v4766_v16 }
  0x5c   :  { %v320_v14 = vld [vmem:[#allocation2 + $0x780] sm:$0xff]  ;;  %v4759_v18 = vcombine.high %v192_v12, %v196_v13  ;;  %3293 = vmatprep.subr.bf16.mxu1 %v4895_v11  ;;  %v4758_v24 = vcombine.low %v192_v12, %v196_v13 }
  0x5d   :  { %v324_v15 = vld [vmem:[#allocation2 + $0x7a0] sm:$0xff]  ;;  %3294 = vmatpush2.bf16.msra.mxu1 %v4894_v17 }
  0x5e   :  { %v4887_v19 = vcombine.high %v320_v14, %v324_v15  ;;  %v184_v20 = vld [vmem:[#allocation2 + $0x340] sm:$0xff]  ;;  %3252 = vmatprep.subr.bf16.mxu0 %v4759_v18  ;;  %v4886_v25 = vcombine.low %v320_v14, %v324_v15 }
  0x5f   :  { %v188_v21 = vld [vmem:[#allocation2 + $0x360] sm:$0xff]  ;;  %3253 = vmatpush2.bf16.msra.mxu0 %v4758_v24  ;;  %v5561_v24 = vld [vmem:[%s5727_s0 + $0x30] sm:$0xff] }
  0x60   :  { %v312_v22 = vld [vmem:[#allocation2 + $0x740] sm:$0xff]  ;;  %v4751_v26 = vcombine.high %v184_v20, %v188_v21  ;;  %3295 = vmatprep.subr.bf16.mxu1 %v4887_v19  ;;  %v4750_v32 = vcombine.low %v184_v20, %v188_v21  ;;  %v5551_v21 = vcombine.low %v5522_v54, %v5527_v55  ;;  %v5570_v54 = vld [vmem:[%s5727_s0 + $0x18] sm:$0xff] }
  0x61   :  { %v316_v23 = vld [vmem:[#allocation2 + $0x760] sm:$0xff]  ;;  %3296 = vmatpush2.bf16.msra.mxu1 %v4886_v25  ;;  %v5565_v25 = vcombine.low %v5536_v59, %v5541_v60  ;;  %v5575_v55 = vld [vmem:[%s5727_s0 + $0x38] sm:$0xff] }
  0x62   :  { %v4879_v27 = vcombine.high %v312_v22, %v316_v23  ;;  %v176_v28 = vld [vmem:[#allocation2 + $0x300] sm:$0xff]  ;;  %3254 = vmatprep.subr.bf16.mxu0 %v4751_v26  ;;  %v4878_v33 = vcombine.low %v312_v22, %v316_v23  ;;  %v5556_v23 = vld [vmem:[%s5727_s0 + $0x10] sm:$0xff] }
  0x63   :  { %v180_v29 = vld [vmem:[#allocation2 + $0x320] sm:$0xff]  ;;  %3255 = vmatpush2.bf16.msra.mxu0 %v4750_v32  ;;  %v5579_v60 = vcombine.high %v5556_v23, %v5561_v24 }
  0x64   :  { %v304_v30 = vld [vmem:[#allocation2 + $0x700] sm:$0xff]  ;;  %v4743_v34 = vcombine.high %v176_v28, %v180_v29  ;;  %3297 = vmatprep.subr.bf16.mxu1 %v4879_v27  ;;  %v4742_v40 = vcombine.low %v176_v28, %v180_v29 }
  0x65   :  { %v308_v31 = vld [vmem:[#allocation2 + $0x720] sm:$0xff]  ;;  %3298 = vmatpush2.bf16.msra.mxu1 %v4878_v33  ;;  %v5584_v33 = vcombine.high %v5570_v54, %v5575_v55 }
  0x66   :  { %v4871_v35 = vcombine.high %v304_v30, %v308_v31  ;;  %v168_v36 = vld [vmem:[#allocation2 + $0x2c0] sm:$0xff]  ;;  %3256 = vmatprep.subr.bf16.mxu0 %v4743_v34  ;;  %v4870_v41 = vcombine.low %v304_v30, %v308_v31 }
  0x67   :  { %v172_v37 = vld [vmem:[#allocation2 + $0x2e0] sm:$0xff]  ;;  %3257 = vmatpush2.bf16.msra.mxu0 %v4742_v40 }
  0x68   :  { %v296_v38 = vld [vmem:[#allocation2 + $0x6c0] sm:$0xff]  ;;  %v4735_v42 = vcombine.high %v168_v36, %v172_v37  ;;  %3299 = vmatprep.subr.bf16.mxu1 %v4871_v35  ;;  %v4734_v48 = vcombine.low %v168_v36, %v172_v37 }
  0x69   :  { %v300_v39 = vld [vmem:[#allocation2 + $0x6e0] sm:$0xff]  ;;  %3300 = vmatpush2.bf16.msra.mxu1 %v4870_v41 }
  0x6a   :  { %v4863_v43 = vcombine.high %v296_v38, %v300_v39  ;;  %v160_v44 = vld [vmem:[#allocation2 + $0x280] sm:$0xff]  ;;  %3258 = vmatprep.subr.bf16.mxu0 %v4735_v42  ;;  %v4862_v49 = vcombine.low %v296_v38, %v300_v39 }
  0x6b   :  { %v164_v45 = vld [vmem:[#allocation2 + $0x2a0] sm:$0xff]  ;;  %3259 = vmatpush2.bf16.msra.mxu0 %v4734_v48 }
  0x6c   :  { %v288_v46 = vld [vmem:[#allocation2 + $0x680] sm:$0xff]  ;;  %v4727_v50 = vcombine.high %v160_v44, %v164_v45  ;;  %3301 = vmatprep.subr.bf16.mxu1 %v4863_v43  ;;  %v4726_v61 = vcombine.low %v160_v44, %v164_v45 }
  0x6d   :  { %v292_v47 = vld [vmem:[#allocation2 + $0x6a0] sm:$0xff]  ;;  %3302 = vmatpush2.bf16.msra.mxu1 %v4862_v49 }
  0x6e   :  { %v4855_v51 = vcombine.high %v288_v46, %v292_v47  ;;  %v152_v52 = vld [vmem:[#allocation2 + $0x240] sm:$0xff]  ;;  %3260 = vmatprep.subr.bf16.mxu0 %v4727_v50  ;;  %v4854_v62 = vcombine.low %v288_v46, %v292_v47 }
  0x6f   :  { %v156_v53 = vld [vmem:[#allocation2 + $0x260] sm:$0xff]  ;;  %3261 = vmatpush2.bf16.msra.mxu0 %v4726_v61 }
  0x70   :  { %v280_v56 = vld [vmem:[#allocation2 + $0x640] sm:$0xff]  ;;  %v4719_v0 = vcombine.high %v152_v52, %v156_v53  ;;  %3303 = vmatprep.subr.bf16.mxu1 %v4855_v51  ;;  %v4718_v6 = vcombine.low %v152_v52, %v156_v53 }
  0x71   :  { %v284_v57 = vld [vmem:[#allocation2 + $0x660] sm:$0xff]  ;;  %3304 = vmatpush2.bf16.msra.mxu1 %v4854_v62 }
  0x72   :  { %v4847_v1 = vcombine.high %v280_v56, %v284_v57  ;;  %v144_v2 = vld [vmem:[#allocation2 + $0x200] sm:$0xff]  ;;  %3262 = vmatprep.subr.bf16.mxu0 %v4719_v0  ;;  %v4846_v7 = vcombine.low %v280_v56, %v284_v57 }
  0x73   :  { %v148_v3 = vld [vmem:[#allocation2 + $0x220] sm:$0xff]  ;;  %3263 = vmatpush2.bf16.msra.mxu0 %v4718_v6 }
  0x74   :  { %v272_v4 = vld [vmem:[#allocation2 + $0x600] sm:$0xff]  ;;  %v4711_v8 = vcombine.high %v144_v2, %v148_v3  ;;  %3305 = vmatprep.subr.bf16.mxu1 %v4847_v1  ;;  %v4710_v14 = vcombine.low %v144_v2, %v148_v3 }
  0x75   :  { %v276_v5 = vld [vmem:[#allocation2 + $0x620] sm:$0xff]  ;;  %3306 = vmatpush2.bf16.msra.mxu1 %v4846_v7 }
  0x76   :  { %v4839_v9 = vcombine.high %v272_v4, %v276_v5  ;;  %v392_v10 = vld [vmem:[#allocation2 + $0x9c0] sm:$0xff]  ;;  %3264 = vmatprep.subr.bf16.mxu0 %v4711_v8  ;;  %v4838_v15 = vcombine.low %v272_v4, %v276_v5 }
  0x77   :  { %v396_v11 = vld [vmem:[#allocation2 + $0x9e0] sm:$0xff]  ;;  %3265 = vmatpush2.bf16.msra.mxu0 %v4710_v14 }
  0x78   :  { %v520_v12 = vld [vmem:[#allocation2 + $0xdc0] sm:$0xff]  ;;  %v4959_v16 = vcombine.high %v392_v10, %v396_v11  ;;  %3307 = vmatprep.subr.bf16.mxu1 %v4839_v9  ;;  %v4958_v26 = vcombine.low %v392_v10, %v396_v11 }
  0x79   :  { %v524_v13 = vld [vmem:[#allocation2 + $0xde0] sm:$0xff]  ;;  %3308 = vmatpush2.bf16.msra.mxu1 %v4838_v15 }
  0x7a   :  { %v5087_v17 = vcombine.high %v520_v12, %v524_v13  ;;  %v384_v18 = vld [vmem:[#allocation2 + $0x980] sm:$0xff]  ;;  %3320 = vmatprep.subr.bf16.mxu0 %v4959_v16  ;;  %v5086_v27 = vcombine.low %v520_v12, %v524_v13  ;;  %3267 = vmatmul.mubr.bf16.vlgmr.msra.gmra.mxu0 %v5551_v21 }
  0x7b   :  { %v388_v19 = vld [vmem:[#allocation2 + $0x9a0] sm:$0xff]  ;;  %3321 = vmatpush1.bf16.msra.mxu0 %v4958_v26  ;;  %3352 = vmatprep.mubr.bf16.mxu0 %v5579_v60 }
  0x7c   :  { %v512_v20 = vld [vmem:[#allocation2 + $0xd80] sm:$0xff]  ;;  %v4951_v28 = vcombine.high %v384_v18, %v388_v19  ;;  %3363 = vmatprep.subr.bf16.mxu1 %v5087_v17  ;;  %3310 = vmatmul.mubr.bf16.vlgmr.msra.gmra.mxu1 %v5565_v25  ;;  %v4950_v34 = vcombine.low %v384_v18, %v388_v19 }
  0x7d   :  { %v516_v22 = vld [vmem:[#allocation2 + $0xda0] sm:$0xff]  ;;  %3364 = vmatpush1.bf16.msra.mxu1 %v5086_v27  ;;  %3395 = vmatprep.mubr.bf16.mxu1 %v5584_v33 }
  0x7e   :  { %v5079_v29 = vcombine.high %v512_v20, %v516_v22  ;;  %v376_v30 = vld [vmem:[#allocation2 + $0x940] sm:$0xff]  ;;  %3322 = vmatprep.subr.bf16.mxu0 %v4951_v28  ;;  %v5078_v35 = vcombine.low %v512_v20, %v516_v22 }
  0x7f   :  { %v380_v59 = vld [vmem:[#allocation2 + $0x960] sm:$0xff]  ;;  %3323 = vmatpush1.bf16.msra.mxu0 %v4950_v34 }
  0x80   :  { %v504_v31 = vld [vmem:[#allocation2 + $0xd40] sm:$0xff]  ;;  %v4943_v36 = vcombine.high %v376_v30, %v380_v59  ;;  %3365 = vmatprep.subr.bf16.mxu1 %v5079_v29  ;;  %v4942_v42 = vcombine.low %v376_v30, %v380_v59 }
  0x81   :  { %v508_v32 = vld [vmem:[#allocation2 + $0xd60] sm:$0xff]  ;;  %3366 = vmatpush1.bf16.msra.mxu1 %v5078_v35 }
  0x82   :  { %v368_v37 = vld [vmem:[#allocation2 + $0x900] sm:$0xff]  ;;  %v5071_v40 = vcombine.high %v504_v31, %v508_v32  ;;  %3324 = vmatprep.subr.bf16.mxu0 %v4943_v36  ;;  %v5070_v43 = vcombine.low %v504_v31, %v508_v32 }
  0x83   :  { %v372_v38 = vld [vmem:[#allocation2 + $0x920] sm:$0xff]  ;;  %3325 = vmatpush1.bf16.msra.mxu0 %v4942_v42 }
  0x84   :  { %v496_v39 = vld [vmem:[#allocation2 + $0xd00] sm:$0xff]  ;;  %v4935_v44 = vcombine.high %v368_v37, %v372_v38  ;;  %3367 = vmatprep.subr.bf16.mxu1 %v5071_v40  ;;  %v4934_v50 = vcombine.low %v368_v37, %v372_v38 }
  0x85   :  { %v500_v41 = vld [vmem:[#allocation2 + $0xd20] sm:$0xff]  ;;  %3368 = vmatpush1.bf16.msra.mxu1 %v5070_v43 }
  0x86   :  { %v360_v45 = vld [vmem:[#allocation2 + $0x8c0] sm:$0xff]  ;;  %v5063_v48 = vcombine.high %v496_v39, %v500_v41  ;;  %3326 = vmatprep.subr.bf16.mxu0 %v4935_v44  ;;  %v5062_v51 = vcombine.low %v496_v39, %v500_v41 }
  0x87   :  { %v364_v46 = vld [vmem:[#allocation2 + $0x8e0] sm:$0xff]  ;;  %3327 = vmatpush1.bf16.msra.mxu0 %v4934_v50 }
  0x88   :  { %v488_v47 = vld [vmem:[#allocation2 + $0xcc0] sm:$0xff]  ;;  %v4927_v52 = vcombine.high %v360_v45, %v364_v46  ;;  %3369 = vmatprep.subr.bf16.mxu1 %v5063_v48  ;;  %v4926_v0 = vcombine.low %v360_v45, %v364_v46 }
  0x89   :  { %v492_v49 = vld [vmem:[#allocation2 + $0xce0] sm:$0xff]  ;;  %3370 = vmatpush1.bf16.msra.mxu1 %v5062_v51 }
  0x8a   :  { %v352_v53 = vld [vmem:[#allocation2 + $0x880] sm:$0xff]  ;;  %v5055_v61 = vcombine.high %v488_v47, %v492_v49  ;;  %3328 = vmatprep.subr.bf16.mxu0 %v4927_v52  ;;  %v5054_v1 = vcombine.low %v488_v47, %v492_v49 }
  0x8b   :  { %v356_v56 = vld [vmem:[#allocation2 + $0x8a0] sm:$0xff]  ;;  %3329 = vmatpush1.bf16.msra.mxu0 %v4926_v0 }
  0x8c   :  { %v480_v57 = vld [vmem:[#allocation2 + $0xc80] sm:$0xff]  ;;  %v4919_v2 = vcombine.high %v352_v53, %v356_v56  ;;  %3371 = vmatprep.subr.bf16.mxu1 %v5055_v61  ;;  %v4918_v8 = vcombine.low %v352_v53, %v356_v56 }
  0x8d   :  { %v484_v62 = vld [vmem:[#allocation2 + $0xca0] sm:$0xff]  ;;  %3372 = vmatpush1.bf16.msra.mxu1 %v5054_v1 }
  0x8e   :  { %v344_v3 = vld [vmem:[#allocation2 + $0x840] sm:$0xff]  ;;  %v5047_v6 = vcombine.high %v480_v57, %v484_v62  ;;  %3330 = vmatprep.subr.bf16.mxu0 %v4919_v2  ;;  %v5046_v9 = vcombine.low %v480_v57, %v484_v62 }
  0x8f   :  { %v348_v4 = vld [vmem:[#allocation2 + $0x860] sm:$0xff]  ;;  %3331 = vmatpush1.bf16.msra.mxu0 %v4918_v8 }
  0x90   :  { %v472_v5 = vld [vmem:[#allocation2 + $0xc40] sm:$0xff]  ;;  %v4911_v10 = vcombine.high %v344_v3, %v348_v4  ;;  %3373 = vmatprep.subr.bf16.mxu1 %v5047_v6  ;;  %v4910_v16 = vcombine.low %v344_v3, %v348_v4 }
  0x91   :  { %v476_v7 = vld [vmem:[#allocation2 + $0xc60] sm:$0xff]  ;;  %3374 = vmatpush1.bf16.msra.mxu1 %v5046_v9 }
  0x92   :  { %v336_v11 = vld [vmem:[#allocation2 + $0x800] sm:$0xff]  ;;  %v5039_v14 = vcombine.high %v472_v5, %v476_v7  ;;  %3332 = vmatprep.subr.bf16.mxu0 %v4911_v10  ;;  %v5038_v17 = vcombine.low %v472_v5, %v476_v7 }
  0x93   :  { %v340_v12 = vld [vmem:[#allocation2 + $0x820] sm:$0xff]  ;;  %3333 = vmatpush1.bf16.msra.mxu0 %v4910_v16 }
  0x94   :  { %v464_v13 = vld [vmem:[#allocation2 + $0xc00] sm:$0xff]  ;;  %v4903_v18 = vcombine.high %v336_v11, %v340_v12  ;;  %3375 = vmatprep.subr.bf16.mxu1 %v5039_v14  ;;  %v4902_v28 = vcombine.low %v336_v11, %v340_v12 }
  0x95   :  { %v468_v15 = vld [vmem:[#allocation2 + $0xc20] sm:$0xff]  ;;  %3376 = vmatpush1.bf16.msra.mxu1 %v5038_v17 }
  0x96   :  { %v456_v19 = vld [vmem:[#allocation2 + $0xbc0] sm:$0xff]  ;;  %v5031_v26 = vcombine.high %v464_v13, %v468_v15  ;;  %3334 = vmatprep.subr.bf16.mxu0 %v4903_v18  ;;  %v5030_v29 = vcombine.low %v464_v13, %v468_v15 }
  0x97   :  { %v460_v20 = vld [vmem:[#allocation2 + $0xbe0] sm:$0xff]  ;;  %3335 = vmatpush1.bf16.msra.mxu0 %v4902_v28 }
  0x98   :  { %v584_v22 = vld [vmem:[#allocation2 + $0xfc0] sm:$0xff]  ;;  %v5023_v30 = vcombine.high %v456_v19, %v460_v20  ;;  %3377 = vmatprep.subr.bf16.mxu1 %v5031_v26  ;;  %v5022_v36 = vcombine.low %v456_v19, %v460_v20 }
  0x99   :  { %v588_v27 = vld [vmem:[#allocation2 + $0xfe0] sm:$0xff]  ;;  %3378 = vmatpush1.bf16.msra.mxu1 %v5030_v29 }
  0x9a   :  { %v448_v59 = vld [vmem:[#allocation2 + $0xb80] sm:$0xff]  ;;  %v5151_v34 = vcombine.high %v584_v22, %v588_v27  ;;  %3336 = vmatprep.subr.bf16.mxu0 %v5023_v30  ;;  %v5150_v37 = vcombine.low %v584_v22, %v588_v27 }
  0x9b   :  { %v452_v31 = vld [vmem:[#allocation2 + $0xba0] sm:$0xff]  ;;  %3337 = vmatpush2.bf16.msra.mxu0 %v5022_v36 }
  0x9c   :  { %v576_v32 = vld [vmem:[#allocation2 + $0xf80] sm:$0xff]  ;;  %v5015_v38 = vcombine.high %v448_v59, %v452_v31  ;;  %3379 = vmatprep.subr.bf16.mxu1 %v5151_v34  ;;  %v5014_v44 = vcombine.low %v448_v59, %v452_v31  ;;  %v141_v34 = vld [vmem:[#allocation2 + $0x1e8] sm:$0xff] }
  0x9d   :  { %v580_v35 = vld [vmem:[#allocation2 + $0xfa0] sm:$0xff]  ;;  %3380 = vmatpush2.bf16.msra.mxu1 %v5150_v37  ;;  %v269_v37 = vld [vmem:[#allocation2 + $0x5e8] sm:$0xff] }
  0x9e   :  { %v440_v39 = vld [vmem:[#allocation2 + $0xb40] sm:$0xff]  ;;  %v5143_v42 = vcombine.high %v576_v32, %v580_v35  ;;  %3338 = vmatprep.subr.bf16.mxu0 %v5015_v38  ;;  %v5142_v45 = vcombine.low %v576_v32, %v580_v35  ;;  %v137_v32 = vld [vmem:[#allocation2 + $0x1c8] sm:$0xff] }
  0x9f   :  { %v444_v40 = vld [vmem:[#allocation2 + $0xb60] sm:$0xff]  ;;  %3339 = vmatpush2.bf16.msra.mxu0 %v5014_v44  ;;  %v265_v35 = vld [vmem:[#allocation2 + $0x5c8] sm:$0xff] }
  0xa0   :  { %v568_v41 = vld [vmem:[#allocation2 + $0xf40] sm:$0xff]  ;;  %v5007_v46 = vcombine.high %v440_v39, %v444_v40  ;;  %3381 = vmatprep.subr.bf16.mxu1 %v5143_v42  ;;  %v5006_v52 = vcombine.low %v440_v39, %v444_v40  ;;  %v4705_v40 = vcombine.high %v137_v32, %v141_v34  ;;  %v133_v42 = vld [vmem:[#allocation2 + $0x1a8] sm:$0xff]  ;;  %v4833_v44 = vcombine.high %v265_v35, %v269_v37 }
  0xa1   :  { %v572_v43 = vld [vmem:[#allocation2 + $0xf60] sm:$0xff]  ;;  %3382 = vmatpush2.bf16.msra.mxu1 %v5142_v45  ;;  %v261_v45 = vld [vmem:[#allocation2 + $0x5a8] sm:$0xff] }
  0xa2   :  { %v432_v47 = vld [vmem:[#allocation2 + $0xb00] sm:$0xff]  ;;  %v5135_v50 = vcombine.high %v568_v41, %v572_v43  ;;  %3340 = vmatprep.subr.bf16.mxu0 %v5007_v46  ;;  %v5134_v53 = vcombine.low %v568_v41, %v572_v43  ;;  %v129_v41 = vld [vmem:[#allocation2 + $0x188] sm:$0xff]  ;;  %v5591_v46 = vcombine.low %v5556_v23, %v5561_v24 }
  0xa3   :  { %v436_v48 = vld [vmem:[#allocation2 + $0xb20] sm:$0xff]  ;;  %3341 = vmatpush2.bf16.msra.mxu0 %v5006_v52  ;;  %v257_v43 = vld [vmem:[#allocation2 + $0x588] sm:$0xff]  ;;  %v4696_v23 = vcombine.low %v129_v41, %v133_v42 }
  0xa4   :  { %v560_v49 = vld [vmem:[#allocation2 + $0xf00] sm:$0xff]  ;;  %v4999_v56 = vcombine.high %v432_v47, %v436_v48  ;;  %3383 = vmatprep.subr.bf16.mxu1 %v5135_v50  ;;  %v4998_v2 = vcombine.low %v432_v47, %v436_v48  ;;  %v5595_v47 = vcombine.low %v5570_v54, %v5575_v55  ;;  %v4704_v48 = vcombine.low %v137_v32, %v141_v34  ;;  %v81_v34 = vld [vmem:[#allocation2 + $0x8] sm:$0xff] }
  0xa5   :  { %v564_v51 = vld [vmem:[#allocation2 + $0xf20] sm:$0xff]  ;;  %3384 = vmatpush2.bf16.msra.mxu1 %v5134_v53  ;;  %v4697_v50 = vcombine.high %v129_v41, %v133_v42  ;;  %v4825_v52 = vcombine.high %v257_v43, %v261_v45  ;;  %v125_v53 = vld [vmem:[#allocation2 + $0x168] sm:$0xff]  ;;  %v4824_v24 = vcombine.low %v257_v43, %v261_v45 }
  0xa6   :  { %v424_v57 = vld [vmem:[#allocation2 + $0xac0] sm:$0xff]  ;;  %v5127_v0 = vcombine.high %v560_v49, %v564_v51  ;;  %3342 = vmatprep.subr.bf16.mxu0 %v4999_v56  ;;  %v5126_v3 = vcombine.low %v560_v49, %v564_v51  ;;  %v4832_v49 = vcombine.low %v265_v35, %v269_v37  ;;  %v121_v51 = vld [vmem:[#allocation2 + $0x148] sm:$0xff] }
  0xa7   :  { %v428_v61 = vld [vmem:[#allocation2 + $0xae0] sm:$0xff]  ;;  %3343 = vmatpush2.bf16.msra.mxu0 %v4998_v2  ;;  %v249_v56 = vld [vmem:[#allocation2 + $0x548] sm:$0xff]  ;;  %v4689_v54 = vcombine.high %v121_v51, %v125_v53  ;;  %v4688_v2 = vcombine.low %v121_v51, %v125_v53 }
  0xa8   :  { %v552_v62 = vld [vmem:[#allocation2 + $0xec0] sm:$0xff]  ;;  %v4991_v4 = vcombine.high %v424_v57, %v428_v61  ;;  %3385 = vmatprep.subr.bf16.mxu1 %v5127_v0  ;;  %v4990_v10 = vcombine.low %v424_v57, %v428_v61  ;;  %v253_v57 = vld [vmem:[#allocation2 + $0x568] sm:$0xff] }
  0xa9   :  { %v556_v1 = vld [vmem:[#allocation2 + $0xee0] sm:$0xff]  ;;  %3386 = vmatpush2.bf16.msra.mxu1 %v5126_v3  ;;  %v4817_v55 = vcombine.high %v249_v56, %v253_v57  ;;  %v113_v61 = vld [vmem:[#allocation2 + $0x108] sm:$0xff]  ;;  %v4816_v3 = vcombine.low %v249_v56, %v253_v57 }
  0xaa   :  { %v416_v5 = vld [vmem:[#allocation2 + $0xa80] sm:$0xff]  ;;  %v5119_v8 = vcombine.high %v552_v62, %v556_v1  ;;  %3344 = vmatprep.subr.bf16.mxu0 %v4991_v4  ;;  %v5118_v11 = vcombine.low %v552_v62, %v556_v1  ;;  %v117_v62 = vld [vmem:[#allocation2 + $0x128] sm:$0xff] }
  0xab   :  { %v420_v6 = vld [vmem:[#allocation2 + $0xaa0] sm:$0xff]  ;;  %3345 = vmatpush2.bf16.msra.mxu0 %v4990_v10  ;;  %v241_v0 = vld [vmem:[#allocation2 + $0x508] sm:$0xff]  ;;  %v4681_v4 = vcombine.high %v113_v61, %v117_v62  ;;  %v4680_v10 = vcombine.low %v113_v61, %v117_v62 }
  0xac   :  { %v544_v7 = vld [vmem:[#allocation2 + $0xe80] sm:$0xff]  ;;  %v4983_v12 = vcombine.high %v416_v5, %v420_v6  ;;  %3387 = vmatprep.subr.bf16.mxu1 %v5119_v8  ;;  %v4982_v18 = vcombine.low %v416_v5, %v420_v6  ;;  %v245_v1 = vld [vmem:[#allocation2 + $0x528] sm:$0xff] }
  0xad   :  { %v548_v9 = vld [vmem:[#allocation2 + $0xea0] sm:$0xff]  ;;  %3388 = vmatpush2.bf16.msra.mxu1 %v5118_v11  ;;  %v4809_v5 = vcombine.high %v241_v0, %v245_v1  ;;  %v105_v6 = vld [vmem:[#allocation2 + $0xc8] sm:$0xff]  ;;  %v4808_v11 = vcombine.low %v241_v0, %v245_v1 }
  0xae   :  { %v408_v13 = vld [vmem:[#allocation2 + $0xa40] sm:$0xff]  ;;  %v5111_v16 = vcombine.high %v544_v7, %v548_v9  ;;  %3346 = vmatprep.subr.bf16.mxu0 %v4983_v12  ;;  %v5110_v19 = vcombine.low %v544_v7, %v548_v9  ;;  %v109_v7 = vld [vmem:[#allocation2 + $0xe8] sm:$0xff] }
  0xaf   :  { %v412_v14 = vld [vmem:[#allocation2 + $0xa60] sm:$0xff]  ;;  %3347 = vmatpush2.bf16.msra.mxu0 %v4982_v18  ;;  %v233_v8 = vld [vmem:[#allocation2 + $0x4c8] sm:$0xff]  ;;  %v4673_v12 = vcombine.high %v105_v6, %v109_v7  ;;  %v4672_v18 = vcombine.low %v105_v6, %v109_v7 }
  0xb0   :  { %v536_v15 = vld [vmem:[#allocation2 + $0xe40] sm:$0xff]  ;;  %v4975_v20 = vcombine.high %v408_v13, %v412_v14  ;;  %3389 = vmatprep.subr.bf16.mxu1 %v5111_v16  ;;  %v4974_v30 = vcombine.low %v408_v13, %v412_v14  ;;  %v237_v9 = vld [vmem:[#allocation2 + $0x4e8] sm:$0xff] }
  0xb1   :  { %v540_v17 = vld [vmem:[#allocation2 + $0xe60] sm:$0xff]  ;;  %3390 = vmatpush2.bf16.msra.mxu1 %v5110_v19  ;;  %v4801_v13 = vcombine.high %v233_v8, %v237_v9  ;;  %v97_v14 = vld [vmem:[#allocation2 + $0x88] sm:$0xff]  ;;  %v4800_v19 = vcombine.low %v233_v8, %v237_v9 }
  0xb2   :  { %v400_v22 = vld [vmem:[#allocation2 + $0xa00] sm:$0xff]  ;;  %v5103_v28 = vcombine.high %v536_v15, %v540_v17  ;;  %3348 = vmatprep.subr.bf16.mxu0 %v4975_v20  ;;  %v5102_v59 = vcombine.low %v536_v15, %v540_v17  ;;  %v101_v15 = vld [vmem:[#allocation2 + $0xa8] sm:$0xff] }
  0xb3   :  { %v404_v26 = vld [vmem:[#allocation2 + $0xa20] sm:$0xff]  ;;  %3349 = vmatpush2.bf16.msra.mxu0 %v4974_v30  ;;  %v225_v16 = vld [vmem:[#allocation2 + $0x488] sm:$0xff]  ;;  %v4665_v20 = vcombine.high %v97_v14, %v101_v15  ;;  %v4664_v30 = vcombine.low %v97_v14, %v101_v15 }
  0xb4   :  { %v528_v27 = vld [vmem:[#allocation2 + $0xe00] sm:$0xff]  ;;  %v4967_v31 = vcombine.high %v400_v22, %v404_v26  ;;  %3391 = vmatprep.subr.bf16.mxu1 %v5103_v28  ;;  %v4966_v38 = vcombine.low %v400_v22, %v404_v26  ;;  %v229_v17 = vld [vmem:[#allocation2 + $0x4a8] sm:$0xff] }
  0xb5   :  { %v532_v29 = vld [vmem:[#allocation2 + $0xe20] sm:$0xff]  ;;  %3392 = vmatpush2.bf16.msra.mxu1 %v5102_v59  ;;  %v4793_v22 = vcombine.high %v225_v16, %v229_v17  ;;  %v89_v26 = vld [vmem:[#allocation2 + $0x48] sm:$0xff]  ;;  %v4792_v59 = vcombine.low %v225_v16, %v229_v17 }
  0xb6   :  { %v5095_v36 = vcombine.high %v528_v27, %v532_v29  ;;  %3350 = vmatprep.subr.bf16.mxu0 %v4967_v31  ;;  %v5094_v39 = vcombine.low %v528_v27, %v532_v29  ;;  %v93_v27 = vld [vmem:[#allocation2 + $0x68] sm:$0xff] }
  0xb7   :  { %3351 = vmatpush2.bf16.msra.mxu0 %v4966_v38  ;;  %v217_v28 = vld [vmem:[#allocation2 + $0x448] sm:$0xff]  ;;  %v4657_v31 = vcombine.high %v89_v26, %v93_v27  ;;  %v4656_v38 = vcombine.low %v89_v26, %v93_v27 }
  0xb8   :  { %3393 = vmatprep.subr.bf16.mxu1 %v5095_v36  ;;  %3406 = vmatprep.subr.bf16.mxu0 %v4705_v40  ;;  %v221_v29 = vld [vmem:[#allocation2 + $0x468] sm:$0xff] }
  0xb9   :  { %3394 = vmatpush2.bf16.msra.mxu1 %v5094_v39  ;;  %v4785_v32 = vcombine.high %v217_v28, %v221_v29  ;;  %v85_v35 = vld [vmem:[#allocation2 + $0x28] sm:$0xff]  ;;  %v4784_v39 = vcombine.low %v217_v28, %v221_v29 }
  0xba   :  { %3449 = vmatprep.subr.bf16.mxu1 %v4833_v44  ;;  %3353 = vmatmul.mubr.bf16.vlgmr.msra.gmra.mxu0 %v5591_v46  ;;  %v209_v36 = vld [vmem:[#allocation2 + $0x408] sm:$0xff]  ;;  %v4649_v40 = vcombine.high %v81_v34, %v85_v35 }
  0xbb   :  { %3407 = vmatpush1.bf16.msra.mxu0 %v4704_v48  ;;  %3438 = vmatprep.mubr.bf16.mxu0 %v5531_v58  ;;  %v213_v37 = vld [vmem:[#allocation2 + $0x428] sm:$0xff]  ;;  %v4648_v48 = vcombine.low %v81_v34, %v85_v35 }
  0xbc   :  { %3396 = vmatmul.mubr.bf16.vlgmr.msra.gmra.mxu1 %v5595_v47  ;;  %3408 = vmatprep.subr.bf16.mxu0 %v4697_v50  ;;  %v4777_v41 = vcombine.high %v209_v36, %v213_v37  ;;  %v201_v42 = vld [vmem:[#allocation2 + $0x3c8] sm:$0xff] }
  0xbd   :  { %3450 = vmatpush1.bf16.msra.mxu1 %v4832_v49  ;;  %3481 = vmatprep.mubr.bf16.mxu1 %v5545_v63  ;;  %v205_v43 = vld [vmem:[#allocation2 + $0x3e8] sm:$0xff]  ;;  %v4776_v49 = vcombine.low %v209_v36, %v213_v37 }
  0xbe   :  { %3451 = vmatprep.subr.bf16.mxu1 %v4825_v52  ;;  %v329_v44 = vld [vmem:[#allocation2 + $0x7c8] sm:$0xff]  ;;  %v4769_v50 = vcombine.high %v201_v42, %v205_v43 }
  0xbf   :  { %3409 = vmatpush1.bf16.msra.mxu0 %v4696_v23  ;;  %v333_v45 = vld [vmem:[#allocation2 + $0x7e8] sm:$0xff]  ;;  %v4768_v23 = vcombine.low %v201_v42, %v205_v43 }
  0xc0   :  { %3410 = vmatprep.subr.bf16.mxu0 %v4689_v54  ;;  %v4897_v51 = vcombine.high %v329_v44, %v333_v45  ;;  %v193_v52 = vld [vmem:[#allocation2 + $0x388] sm:$0xff] }
  0xc1   :  { %3452 = vmatpush1.bf16.msra.mxu1 %v4824_v24  ;;  %v197_v53 = vld [vmem:[#allocation2 + $0x3a8] sm:$0xff]  ;;  %v4896_v24 = vcombine.low %v329_v44, %v333_v45 }
  0xc2   :  { %3453 = vmatprep.subr.bf16.mxu1 %v4817_v55  ;;  %v321_v56 = vld [vmem:[#allocation2 + $0x788] sm:$0xff]  ;;  %v4761_v54 = vcombine.high %v193_v52, %v197_v53 }
  0xc3   :  { %3411 = vmatpush1.bf16.msra.mxu0 %v4688_v2  ;;  %v325_v57 = vld [vmem:[#allocation2 + $0x7a8] sm:$0xff]  ;;  %v4760_v2 = vcombine.low %v193_v52, %v197_v53 }
  0xc4   :  { %3412 = vmatprep.subr.bf16.mxu0 %v4681_v4  ;;  %v4889_v55 = vcombine.high %v321_v56, %v325_v57  ;;  %v185_v61 = vld [vmem:[#allocation2 + $0x348] sm:$0xff] }
  0xc5   :  { %3454 = vmatpush1.bf16.msra.mxu1 %v4816_v3  ;;  %v189_v62 = vld [vmem:[#allocation2 + $0x368] sm:$0xff]  ;;  %v4888_v3 = vcombine.low %v321_v56, %v325_v57 }
  0xc6   :  { %3455 = vmatprep.subr.bf16.mxu1 %v4809_v5  ;;  %v313_v0 = vld [vmem:[#allocation2 + $0x748] sm:$0xff]  ;;  %v4753_v4 = vcombine.high %v185_v61, %v189_v62 }
  0xc7   :  { %3413 = vmatpush1.bf16.msra.mxu0 %v4680_v10  ;;  %v317_v1 = vld [vmem:[#allocation2 + $0x768] sm:$0xff]  ;;  %v4752_v10 = vcombine.low %v185_v61, %v189_v62 }
  0xc8   :  { %3414 = vmatprep.subr.bf16.mxu0 %v4673_v12  ;;  %v4881_v5 = vcombine.high %v313_v0, %v317_v1  ;;  %v177_v6 = vld [vmem:[#allocation2 + $0x308] sm:$0xff] }
  0xc9   :  { %3456 = vmatpush1.bf16.msra.mxu1 %v4808_v11  ;;  %v181_v7 = vld [vmem:[#allocation2 + $0x328] sm:$0xff]  ;;  %v4880_v11 = vcombine.low %v313_v0, %v317_v1 }
  0xca   :  { %3457 = vmatprep.subr.bf16.mxu1 %v4801_v13  ;;  %v305_v8 = vld [vmem:[#allocation2 + $0x708] sm:$0xff]  ;;  %v4745_v12 = vcombine.high %v177_v6, %v181_v7 }
  0xcb   :  { %3415 = vmatpush1.bf16.msra.mxu0 %v4672_v18  ;;  %v309_v9 = vld [vmem:[#allocation2 + $0x728] sm:$0xff]  ;;  %v4744_v18 = vcombine.low %v177_v6, %v181_v7 }
  0xcc   :  { %3416 = vmatprep.subr.bf16.mxu0 %v4665_v20  ;;  %v4873_v13 = vcombine.high %v305_v8, %v309_v9  ;;  %v169_v14 = vld [vmem:[#allocation2 + $0x2c8] sm:$0xff] }
  0xcd   :  { %3458 = vmatpush1.bf16.msra.mxu1 %v4800_v19  ;;  %v173_v15 = vld [vmem:[#allocation2 + $0x2e8] sm:$0xff]  ;;  %v4872_v19 = vcombine.low %v305_v8, %v309_v9 }
  0xce   :  { %3459 = vmatprep.subr.bf16.mxu1 %v4793_v22  ;;  %v297_v16 = vld [vmem:[#allocation2 + $0x6c8] sm:$0xff]  ;;  %v4737_v20 = vcombine.high %v169_v14, %v173_v15 }
  0xcf   :  { %3417 = vmatpush1.bf16.msra.mxu0 %v4664_v30  ;;  %v301_v17 = vld [vmem:[#allocation2 + $0x6e8] sm:$0xff]  ;;  %v4736_v30 = vcombine.low %v169_v14, %v173_v15 }
  0xd0   :  { %3418 = vmatprep.subr.bf16.mxu0 %v4657_v31  ;;  %v4865_v22 = vcombine.high %v297_v16, %v301_v17  ;;  %v161_v26 = vld [vmem:[#allocation2 + $0x288] sm:$0xff] }
  0xd1   :  { %3460 = vmatpush1.bf16.msra.mxu1 %v4792_v59  ;;  %v165_v27 = vld [vmem:[#allocation2 + $0x2a8] sm:$0xff]  ;;  %v4864_v59 = vcombine.low %v297_v16, %v301_v17 }
  0xd2   :  { %3461 = vmatprep.subr.bf16.mxu1 %v4785_v32  ;;  %v289_v28 = vld [vmem:[#allocation2 + $0x688] sm:$0xff]  ;;  %v4729_v31 = vcombine.high %v161_v26, %v165_v27 }
  0xd3   :  { %3419 = vmatpush1.bf16.msra.mxu0 %v4656_v38  ;;  %v293_v29 = vld [vmem:[#allocation2 + $0x6a8] sm:$0xff]  ;;  %v4728_v38 = vcombine.low %v161_v26, %v165_v27 }
  0xd4   :  { %3420 = vmatprep.subr.bf16.mxu0 %v4649_v40  ;;  %v4857_v32 = vcombine.high %v289_v28, %v293_v29  ;;  %v153_v34 = vld [vmem:[#allocation2 + $0x248] sm:$0xff] }
  0xd5   :  { %3462 = vmatpush1.bf16.msra.mxu1 %v4784_v39  ;;  %v157_v35 = vld [vmem:[#allocation2 + $0x268] sm:$0xff]  ;;  %v4856_v39 = vcombine.low %v289_v28, %v293_v29 }
  0xd6   :  { %3463 = vmatprep.subr.bf16.mxu1 %v4777_v41  ;;  %v281_v36 = vld [vmem:[#allocation2 + $0x648] sm:$0xff]  ;;  %v4721_v40 = vcombine.high %v153_v34, %v157_v35 }
  0xd7   :  { %3421 = vmatpush1.bf16.msra.mxu0 %v4648_v48  ;;  %v285_v37 = vld [vmem:[#allocation2 + $0x668] sm:$0xff]  ;;  %v4720_v48 = vcombine.low %v153_v34, %v157_v35 }
  0xd8   :  { %3422 = vmatprep.subr.bf16.mxu0 %v4769_v50  ;;  %v4849_v41 = vcombine.high %v281_v36, %v285_v37  ;;  %v145_v42 = vld [vmem:[#allocation2 + $0x208] sm:$0xff] }
  0xd9   :  { %3464 = vmatpush1.bf16.msra.mxu1 %v4776_v49  ;;  %v149_v43 = vld [vmem:[#allocation2 + $0x228] sm:$0xff]  ;;  %v4848_v49 = vcombine.low %v281_v36, %v285_v37 }
  0xda   :  { %3465 = vmatprep.subr.bf16.mxu1 %v4897_v51  ;;  %v273_v44 = vld [vmem:[#allocation2 + $0x608] sm:$0xff]  ;;  %v4713_v50 = vcombine.high %v145_v42, %v149_v43 }
  0xdb   :  { %3423 = vmatpush2.bf16.msra.mxu0 %v4768_v23  ;;  %v277_v45 = vld [vmem:[#allocation2 + $0x628] sm:$0xff]  ;;  %v4712_v23 = vcombine.low %v145_v42, %v149_v43 }
  0xdc   :  { %3424 = vmatprep.subr.bf16.mxu0 %v4761_v54  ;;  %v4841_v51 = vcombine.high %v273_v44, %v277_v45  ;;  %v393_v52 = vld [vmem:[#allocation2 + $0x9c8] sm:$0xff] }
  0xdd   :  { %3466 = vmatpush2.bf16.msra.mxu1 %v4896_v24  ;;  %v397_v53 = vld [vmem:[#allocation2 + $0x9e8] sm:$0xff]  ;;  %v4840_v24 = vcombine.low %v273_v44, %v277_v45 }
  0xde   :  { %3467 = vmatprep.subr.bf16.mxu1 %v4889_v55  ;;  %v521_v56 = vld [vmem:[#allocation2 + $0xdc8] sm:$0xff]  ;;  %v4961_v54 = vcombine.high %v393_v52, %v397_v53 }
  0xdf   :  { %3425 = vmatpush2.bf16.msra.mxu0 %v4760_v2  ;;  %v525_v57 = vld [vmem:[#allocation2 + $0xde8] sm:$0xff]  ;;  %v4960_v2 = vcombine.low %v393_v52, %v397_v53 }
  0xe0   :  { %3426 = vmatprep.subr.bf16.mxu0 %v4753_v4  ;;  %v5089_v55 = vcombine.high %v521_v56, %v525_v57  ;;  %v385_v61 = vld [vmem:[#allocation2 + $0x988] sm:$0xff] }
  0xe1   :  { %3468 = vmatpush2.bf16.msra.mxu1 %v4888_v3  ;;  %v389_v62 = vld [vmem:[#allocation2 + $0x9a8] sm:$0xff]  ;;  %v5088_v3 = vcombine.low %v521_v56, %v525_v57 }
  0xe2   :  { %3469 = vmatprep.subr.bf16.mxu1 %v4881_v5  ;;  %v513_v0 = vld [vmem:[#allocation2 + $0xd88] sm:$0xff]  ;;  %v4953_v4 = vcombine.high %v385_v61, %v389_v62 }
  0xe3   :  { %3427 = vmatpush2.bf16.msra.mxu0 %v4752_v10  ;;  %v517_v1 = vld [vmem:[#allocation2 + $0xda8] sm:$0xff]  ;;  %v4952_v10 = vcombine.low %v385_v61, %v389_v62 }
  0xe4   :  { %3428 = vmatprep.subr.bf16.mxu0 %v4745_v12  ;;  %v5081_v5 = vcombine.high %v513_v0, %v517_v1  ;;  %v377_v6 = vld [vmem:[#allocation2 + $0x948] sm:$0xff] }
  0xe5   :  { %3470 = vmatpush2.bf16.msra.mxu1 %v4880_v11  ;;  %v381_v7 = vld [vmem:[#allocation2 + $0x968] sm:$0xff]  ;;  %v5080_v11 = vcombine.low %v513_v0, %v517_v1 }
  0xe6   :  { %3471 = vmatprep.subr.bf16.mxu1 %v4873_v13  ;;  %v505_v8 = vld [vmem:[#allocation2 + $0xd48] sm:$0xff]  ;;  %v4945_v12 = vcombine.high %v377_v6, %v381_v7 }
  0xe7   :  { %3429 = vmatpush2.bf16.msra.mxu0 %v4744_v18  ;;  %v509_v9 = vld [vmem:[#allocation2 + $0xd68] sm:$0xff]  ;;  %v4944_v18 = vcombine.low %v377_v6, %v381_v7 }
  0xe8   :  { %3430 = vmatprep.subr.bf16.mxu0 %v4737_v20  ;;  %v5073_v13 = vcombine.high %v505_v8, %v509_v9  ;;  %v369_v14 = vld [vmem:[#allocation2 + $0x908] sm:$0xff] }
  0xe9   :  { %3472 = vmatpush2.bf16.msra.mxu1 %v4872_v19  ;;  %v373_v15 = vld [vmem:[#allocation2 + $0x928] sm:$0xff]  ;;  %v5072_v19 = vcombine.low %v505_v8, %v509_v9 }
  0xea   :  { %3473 = vmatprep.subr.bf16.mxu1 %v4865_v22  ;;  %v497_v16 = vld [vmem:[#allocation2 + $0xd08] sm:$0xff]  ;;  %v4937_v20 = vcombine.high %v369_v14, %v373_v15 }
  0xeb   :  { %3431 = vmatpush2.bf16.msra.mxu0 %v4736_v30  ;;  %v501_v17 = vld [vmem:[#allocation2 + $0xd28] sm:$0xff]  ;;  %v4936_v30 = vcombine.low %v369_v14, %v373_v15 }
  0xec   :  { %3432 = vmatprep.subr.bf16.mxu0 %v4729_v31  ;;  %v5065_v22 = vcombine.high %v497_v16, %v501_v17  ;;  %v361_v26 = vld [vmem:[#allocation2 + $0x8c8] sm:$0xff] }
  0xed   :  { %3474 = vmatpush2.bf16.msra.mxu1 %v4864_v59  ;;  %v365_v27 = vld [vmem:[#allocation2 + $0x8e8] sm:$0xff]  ;;  %v5064_v59 = vcombine.low %v497_v16, %v501_v17 }
  0xee   :  { %3475 = vmatprep.subr.bf16.mxu1 %v4857_v32  ;;  %v489_v28 = vld [vmem:[#allocation2 + $0xcc8] sm:$0xff]  ;;  %v4929_v31 = vcombine.high %v361_v26, %v365_v27 }
  0xef   :  { %3433 = vmatpush2.bf16.msra.mxu0 %v4728_v38  ;;  %v493_v29 = vld [vmem:[#allocation2 + $0xce8] sm:$0xff]  ;;  %v4928_v38 = vcombine.low %v361_v26, %v365_v27 }
  0xf0   :  { %3434 = vmatprep.subr.bf16.mxu0 %v4721_v40  ;;  %v5057_v32 = vcombine.high %v489_v28, %v493_v29  ;;  %v353_v34 = vld [vmem:[#allocation2 + $0x888] sm:$0xff] }
  0xf1   :  { %3476 = vmatpush2.bf16.msra.mxu1 %v4856_v39  ;;  %v357_v35 = vld [vmem:[#allocation2 + $0x8a8] sm:$0xff]  ;;  %v5056_v39 = vcombine.low %v489_v28, %v493_v29 }
  0xf2   :  { %3477 = vmatprep.subr.bf16.mxu1 %v4849_v41  ;;  %v481_v36 = vld [vmem:[#allocation2 + $0xc88] sm:$0xff]  ;;  %v4921_v40 = vcombine.high %v353_v34, %v357_v35 }
  0xf3   :  { %3435 = vmatpush2.bf16.msra.mxu0 %v4720_v48  ;;  %v485_v37 = vld [vmem:[#allocation2 + $0xca8] sm:$0xff]  ;;  %v4920_v48 = vcombine.low %v353_v34, %v357_v35 }
  0xf4   :  { %3436 = vmatprep.subr.bf16.mxu0 %v4713_v50  ;;  %v5049_v41 = vcombine.high %v481_v36, %v485_v37  ;;  %v345_v42 = vld [vmem:[#allocation2 + $0x848] sm:$0xff] }
  0xf5   :  { %3478 = vmatpush2.bf16.msra.mxu1 %v4848_v49  ;;  %v349_v43 = vld [vmem:[#allocation2 + $0x868] sm:$0xff]  ;;  %v5048_v49 = vcombine.low %v481_v36, %v485_v37 }
  0xf6   :  { %3479 = vmatprep.subr.bf16.mxu1 %v4841_v51  ;;  %v473_v44 = vld [vmem:[#allocation2 + $0xc48] sm:$0xff]  ;;  %v4913_v50 = vcombine.high %v345_v42, %v349_v43 }
  0xf7   :  { %3437 = vmatpush2.bf16.msra.mxu0 %v4712_v23  ;;  %v477_v45 = vld [vmem:[#allocation2 + $0xc68] sm:$0xff]  ;;  %v4912_v23 = vcombine.low %v345_v42, %v349_v43 }
  0xf8   :  { %3492 = vmatprep.subr.bf16.mxu0 %v4961_v54  ;;  %v5041_v51 = vcombine.high %v473_v44, %v477_v45  ;;  %v337_v52 = vld [vmem:[#allocation2 + $0x808] sm:$0xff] }
  0xf9   :  { %3480 = vmatpush2.bf16.msra.mxu1 %v4840_v24  ;;  %v341_v53 = vld [vmem:[#allocation2 + $0x828] sm:$0xff]  ;;  %v5040_v24 = vcombine.low %v473_v44, %v477_v45 }
  0xfa   :  { %3535 = vmatprep.subr.bf16.mxu1 %v5089_v55  ;;  %3439 = vmatmul.mubr.bf16.vlgmr.msra.gmra.mxu0 %v5551_v21  ;;  %v465_v56 = vld [vmem:[#allocation2 + $0xc08] sm:$0xff]  ;;  %v4905_v54 = vcombine.high %v337_v52, %v341_v53 }
  0xfb   :  { %3493 = vmatpush1.bf16.msra.mxu0 %v4960_v2  ;;  %3524 = vmatprep.mubr.bf16.mxu0 %v5579_v60  ;;  %v469_v57 = vld [vmem:[#allocation2 + $0xc28] sm:$0xff]  ;;  %v4904_v2 = vcombine.low %v337_v52, %v341_v53 }
  0xfc   :  { %3482 = vmatmul.mubr.bf16.vlgmr.msra.gmra.mxu1 %v5565_v25  ;;  %3494 = vmatprep.subr.bf16.mxu0 %v4953_v4  ;;  %v5033_v55 = vcombine.high %v465_v56, %v469_v57  ;;  %v457_v61 = vld [vmem:[#allocation2 + $0xbc8] sm:$0xff] }
  0xfd   :  { %3536 = vmatpush1.bf16.msra.mxu1 %v5088_v3  ;;  %3567 = vmatprep.mubr.bf16.mxu1 %v5584_v33  ;;  %v461_v62 = vld [vmem:[#allocation2 + $0xbe8] sm:$0xff]  ;;  %v5032_v3 = vcombine.low %v465_v56, %v469_v57 }
  0xfe   :  { %3537 = vmatprep.subr.bf16.mxu1 %v5081_v5  ;;  %v585_v0 = vld [vmem:[#allocation2 + $0xfc8] sm:$0xff]  ;;  %v5025_v4 = vcombine.high %v457_v61, %v461_v62 }
  0xff   :  { %3495 = vmatpush1.bf16.msra.mxu0 %v4952_v10  ;;  %v589_v1 = vld [vmem:[#allocation2 + $0xfe8] sm:$0xff]  ;;  %v5024_v10 = vcombine.low %v457_v61, %v461_v62 }
 0x100   :  { %3496 = vmatprep.subr.bf16.mxu0 %v4945_v12  ;;  %v5153_v5 = vcombine.high %v585_v0, %v589_v1  ;;  %v449_v6 = vld [vmem:[#allocation2 + $0xb88] sm:$0xff] }
 0x101   :  { %3538 = vmatpush1.bf16.msra.mxu1 %v5080_v11  ;;  %v453_v7 = vld [vmem:[#allocation2 + $0xba8] sm:$0xff]  ;;  %v5152_v11 = vcombine.low %v585_v0, %v589_v1 }
 0x102   :  { %3539 = vmatprep.subr.bf16.mxu1 %v5073_v13  ;;  %v577_v8 = vld [vmem:[#allocation2 + $0xf88] sm:$0xff]  ;;  %v5017_v12 = vcombine.high %v449_v6, %v453_v7 }
 0x103   :  { %3497 = vmatpush1.bf16.msra.mxu0 %v4944_v18  ;;  %v581_v9 = vld [vmem:[#allocation2 + $0xfa8] sm:$0xff]  ;;  %v5016_v18 = vcombine.low %v449_v6, %v453_v7  ;;  %v138_v6 = vld [vmem:[#allocation2 + $0x1d0] sm:$0xff] }
 0x104   :  { %3498 = vmatprep.subr.bf16.mxu0 %v4937_v20  ;;  %v5145_v13 = vcombine.high %v577_v8, %v581_v9  ;;  %v441_v14 = vld [vmem:[#allocation2 + $0xb48] sm:$0xff]  ;;  %v142_v7 = vld [vmem:[#allocation2 + $0x1f0] sm:$0xff] }
 0x105   :  { %3540 = vmatpush1.bf16.msra.mxu1 %v5072_v19  ;;  %v445_v15 = vld [vmem:[#allocation2 + $0xb68] sm:$0xff]  ;;  %v5144_v19 = vcombine.low %v577_v8, %v581_v9  ;;  %v266_v8 = vld [vmem:[#allocation2 + $0x5d0] sm:$0xff] }
 0x106   :  { %3541 = vmatprep.subr.bf16.mxu1 %v5065_v22  ;;  %v569_v16 = vld [vmem:[#allocation2 + $0xf48] sm:$0xff]  ;;  %v5009_v20 = vcombine.high %v441_v14, %v445_v15  ;;  %v270_v9 = vld [vmem:[#allocation2 + $0x5f0] sm:$0xff] }
 0x107   :  { %3499 = vmatpush1.bf16.msra.mxu0 %v4936_v30  ;;  %v573_v17 = vld [vmem:[#allocation2 + $0xf68] sm:$0xff]  ;;  %v5008_v30 = vcombine.low %v441_v14, %v445_v15  ;;  %v130_v14 = vld [vmem:[#allocation2 + $0x190] sm:$0xff] }
 0x108   :  { %3500 = vmatprep.subr.bf16.mxu0 %v4929_v31  ;;  %v5137_v22 = vcombine.high %v569_v16, %v573_v17  ;;  %v433_v26 = vld [vmem:[#allocation2 + $0xb08] sm:$0xff]  ;;  %v134_v15 = vld [vmem:[#allocation2 + $0x1b0] sm:$0xff] }
 0x109   :  { %3542 = vmatpush1.bf16.msra.mxu1 %v5064_v59  ;;  %v437_v27 = vld [vmem:[#allocation2 + $0xb28] sm:$0xff]  ;;  %v5136_v59 = vcombine.low %v569_v16, %v573_v17  ;;  %v258_v16 = vld [vmem:[#allocation2 + $0x590] sm:$0xff] }
 0x10a   :  { %3543 = vmatprep.subr.bf16.mxu1 %v5057_v32  ;;  %v561_v28 = vld [vmem:[#allocation2 + $0xf08] sm:$0xff]  ;;  %v5001_v31 = vcombine.high %v433_v26, %v437_v27  ;;  %v262_v17 = vld [vmem:[#allocation2 + $0x5b0] sm:$0xff] }
 0x10b   :  { %3501 = vmatpush1.bf16.msra.mxu0 %v4928_v38  ;;  %v565_v29 = vld [vmem:[#allocation2 + $0xf28] sm:$0xff]  ;;  %v5000_v38 = vcombine.low %v433_v26, %v437_v27  ;;  %v122_v26 = vld [vmem:[#allocation2 + $0x150] sm:$0xff] }
 0x10c   :  { %3502 = vmatprep.subr.bf16.mxu0 %v4921_v40  ;;  %v5129_v32 = vcombine.high %v561_v28, %v565_v29  ;;  %v425_v34 = vld [vmem:[#allocation2 + $0xac8] sm:$0xff]  ;;  %v126_v27 = vld [vmem:[#allocation2 + $0x170] sm:$0xff] }
 0x10d   :  { %3544 = vmatpush1.bf16.msra.mxu1 %v5056_v39  ;;  %v429_v35 = vld [vmem:[#allocation2 + $0xae8] sm:$0xff]  ;;  %v5128_v39 = vcombine.low %v561_v28, %v565_v29  ;;  %v250_v28 = vld [vmem:[#allocation2 + $0x550] sm:$0xff] }
 0x10e   :  { %3545 = vmatprep.subr.bf16.mxu1 %v5049_v41  ;;  %v553_v36 = vld [vmem:[#allocation2 + $0xec8] sm:$0xff]  ;;  %v4993_v40 = vcombine.high %v425_v34, %v429_v35  ;;  %v254_v29 = vld [vmem:[#allocation2 + $0x570] sm:$0xff] }
 0x10f   :  { %3503 = vmatpush1.bf16.msra.mxu0 %v4920_v48  ;;  %v557_v37 = vld [vmem:[#allocation2 + $0xee8] sm:$0xff]  ;;  %v4992_v48 = vcombine.low %v425_v34, %v429_v35  ;;  %v114_v34 = vld [vmem:[#allocation2 + $0x110] sm:$0xff] }
 0x110   :  { %3504 = vmatprep.subr.bf16.mxu0 %v4913_v50  ;;  %v5121_v41 = vcombine.high %v553_v36, %v557_v37  ;;  %v417_v42 = vld [vmem:[#allocation2 + $0xa88] sm:$0xff]  ;;  %v118_v35 = vld [vmem:[#allocation2 + $0x130] sm:$0xff] }
 0x111   :  { %3546 = vmatpush1.bf16.msra.mxu1 %v5048_v49  ;;  %v421_v43 = vld [vmem:[#allocation2 + $0xaa8] sm:$0xff]  ;;  %v5120_v49 = vcombine.low %v553_v36, %v557_v37  ;;  %v242_v36 = vld [vmem:[#allocation2 + $0x510] sm:$0xff] }
 0x112   :  { %3547 = vmatprep.subr.bf16.mxu1 %v5041_v51  ;;  %v545_v44 = vld [vmem:[#allocation2 + $0xe88] sm:$0xff]  ;;  %v4985_v50 = vcombine.high %v417_v42, %v421_v43  ;;  %v246_v37 = vld [vmem:[#allocation2 + $0x530] sm:$0xff] }
 0x113   :  { %3505 = vmatpush1.bf16.msra.mxu0 %v4912_v23  ;;  %v549_v45 = vld [vmem:[#allocation2 + $0xea8] sm:$0xff]  ;;  %v4984_v23 = vcombine.low %v417_v42, %v421_v43  ;;  %v106_v42 = vld [vmem:[#allocation2 + $0xd0] sm:$0xff] }
 0x114   :  { %3506 = vmatprep.subr.bf16.mxu0 %v4905_v54  ;;  %v5113_v51 = vcombine.high %v545_v44, %v549_v45  ;;  %v409_v52 = vld [vmem:[#allocation2 + $0xa48] sm:$0xff]  ;;  %v110_v43 = vld [vmem:[#allocation2 + $0xf0] sm:$0xff] }
 0x115   :  { %3548 = vmatpush1.bf16.msra.mxu1 %v5040_v24  ;;  %v413_v53 = vld [vmem:[#allocation2 + $0xa68] sm:$0xff]  ;;  %v5112_v24 = vcombine.low %v545_v44, %v549_v45  ;;  %v234_v44 = vld [vmem:[#allocation2 + $0x4d0] sm:$0xff] }
 0x116   :  { %3549 = vmatprep.subr.bf16.mxu1 %v5033_v55  ;;  %v537_v56 = vld [vmem:[#allocation2 + $0xe48] sm:$0xff]  ;;  %v4977_v54 = vcombine.high %v409_v52, %v413_v53  ;;  %v238_v45 = vld [vmem:[#allocation2 + $0x4f0] sm:$0xff] }
 0x117   :  { %3507 = vmatpush1.bf16.msra.mxu0 %v4904_v2  ;;  %v541_v57 = vld [vmem:[#allocation2 + $0xe68] sm:$0xff]  ;;  %v4976_v2 = vcombine.low %v409_v52, %v413_v53  ;;  %v98_v52 = vld [vmem:[#allocation2 + $0x90] sm:$0xff] }
 0x118   :  { %3508 = vmatprep.subr.bf16.mxu0 %v5025_v4  ;;  %v5105_v55 = vcombine.high %v537_v56, %v541_v57  ;;  %v401_v61 = vld [vmem:[#allocation2 + $0xa08] sm:$0xff]  ;;  %v102_v53 = vld [vmem:[#allocation2 + $0xb0] sm:$0xff] }
 0x119   :  { %3550 = vmatpush1.bf16.msra.mxu1 %v5032_v3  ;;  %v405_v62 = vld [vmem:[#allocation2 + $0xa28] sm:$0xff]  ;;  %v5104_v3 = vcombine.low %v537_v56, %v541_v57  ;;  %v226_v56 = vld [vmem:[#allocation2 + $0x490] sm:$0xff] }
 0x11a   :  { %3551 = vmatprep.subr.bf16.mxu1 %v5153_v5  ;;  %v529_v0 = vld [vmem:[#allocation2 + $0xe08] sm:$0xff]  ;;  %v4969_v4 = vcombine.high %v401_v61, %v405_v62  ;;  %v230_v57 = vld [vmem:[#allocation2 + $0x4b0] sm:$0xff] }
 0x11b   :  { %3509 = vmatpush2.bf16.msra.mxu0 %v5024_v10  ;;  %v533_v1 = vld [vmem:[#allocation2 + $0xe28] sm:$0xff]  ;;  %v4968_v10 = vcombine.low %v401_v61, %v405_v62  ;;  %v90_v61 = vld [vmem:[#allocation2 + $0x50] sm:$0xff] }
 0x11c   :  { %3510 = vmatprep.subr.bf16.mxu0 %v5017_v12  ;;  %v5097_v5 = vcombine.high %v529_v0, %v533_v1  ;;  %v4707_v12 = vcombine.high %v138_v6, %v142_v7  ;;  %v94_v62 = vld [vmem:[#allocation2 + $0x70] sm:$0xff] }
 0x11d   :  { %3552 = vmatpush2.bf16.msra.mxu1 %v5152_v11  ;;  %v5096_v11 = vcombine.low %v529_v0, %v533_v1  ;;  %v218_v0 = vld [vmem:[#allocation2 + $0x450] sm:$0xff] }
 0x11e   :  { %3553 = vmatprep.subr.bf16.mxu1 %v5145_v13  ;;  %v4835_v13 = vcombine.high %v266_v8, %v270_v9  ;;  %v222_v1 = vld [vmem:[#allocation2 + $0x470] sm:$0xff] }
 0x11f   :  { %3511 = vmatpush2.bf16.msra.mxu0 %v5016_v18  ;;  %v4706_v18 = vcombine.low %v138_v6, %v142_v7  ;;  %v82_v6 = vld [vmem:[#allocation2 + $0x10] sm:$0xff] }
 0x120   :  { %3512 = vmatprep.subr.bf16.mxu0 %v5009_v20  ;;  %v4699_v20 = vcombine.high %v130_v14, %v134_v15  ;;  %v86_v7 = vld [vmem:[#allocation2 + $0x30] sm:$0xff] }
 0x121   :  { %3554 = vmatpush2.bf16.msra.mxu1 %v5144_v19  ;;  %v4834_v19 = vcombine.low %v266_v8, %v270_v9  ;;  %v210_v8 = vld [vmem:[#allocation2 + $0x410] sm:$0xff] }
 0x122   :  { %3555 = vmatprep.subr.bf16.mxu1 %v5137_v22  ;;  %v4827_v22 = vcombine.high %v258_v16, %v262_v17  ;;  %v214_v9 = vld [vmem:[#allocation2 + $0x430] sm:$0xff] }
 0x123   :  { %3513 = vmatpush2.bf16.msra.mxu0 %v5008_v30  ;;  %v4698_v30 = vcombine.low %v130_v14, %v134_v15  ;;  %v202_v14 = vld [vmem:[#allocation2 + $0x3d0] sm:$0xff] }
 0x124   :  { %3514 = vmatprep.subr.bf16.mxu0 %v5001_v31  ;;  %v4691_v31 = vcombine.high %v122_v26, %v126_v27  ;;  %v206_v15 = vld [vmem:[#allocation2 + $0x3f0] sm:$0xff] }
 0x125   :  { %3556 = vmatpush2.bf16.msra.mxu1 %v5136_v59  ;;  %v4826_v59 = vcombine.low %v258_v16, %v262_v17  ;;  %v330_v16 = vld [vmem:[#allocation2 + $0x7d0] sm:$0xff] }
 0x126   :  { %3557 = vmatprep.subr.bf16.mxu1 %v5129_v32  ;;  %v4819_v32 = vcombine.high %v250_v28, %v254_v29  ;;  %v334_v17 = vld [vmem:[#allocation2 + $0x7f0] sm:$0xff] }
 0x127   :  { %3515 = vmatpush2.bf16.msra.mxu0 %v5000_v38  ;;  %v4690_v38 = vcombine.low %v122_v26, %v126_v27  ;;  %v194_v26 = vld [vmem:[#allocation2 + $0x390] sm:$0xff] }
 0x128   :  { %3516 = vmatprep.subr.bf16.mxu0 %v4993_v40  ;;  %v4683_v40 = vcombine.high %v114_v34, %v118_v35  ;;  %v198_v27 = vld [vmem:[#allocation2 + $0x3b0] sm:$0xff] }
 0x129   :  { %3558 = vmatpush2.bf16.msra.mxu1 %v5128_v39  ;;  %v4818_v39 = vcombine.low %v250_v28, %v254_v29  ;;  %v322_v28 = vld [vmem:[#allocation2 + $0x790] sm:$0xff] }
 0x12a   :  { %3559 = vmatprep.subr.bf16.mxu1 %v5121_v41  ;;  %v4811_v41 = vcombine.high %v242_v36, %v246_v37  ;;  %v326_v29 = vld [vmem:[#allocation2 + $0x7b0] sm:$0xff] }
 0x12b   :  { %3517 = vmatpush2.bf16.msra.mxu0 %v4992_v48  ;;  %v4682_v48 = vcombine.low %v114_v34, %v118_v35  ;;  %v186_v34 = vld [vmem:[#allocation2 + $0x350] sm:$0xff] }
 0x12c   :  { %3518 = vmatprep.subr.bf16.mxu0 %v4985_v50  ;;  %v4675_v50 = vcombine.high %v106_v42, %v110_v43  ;;  %v190_v35 = vld [vmem:[#allocation2 + $0x370] sm:$0xff] }
 0x12d   :  { %3560 = vmatpush2.bf16.msra.mxu1 %v5120_v49  ;;  %v4810_v49 = vcombine.low %v242_v36, %v246_v37  ;;  %v314_v36 = vld [vmem:[#allocation2 + $0x750] sm:$0xff] }
 0x12e   :  { %3561 = vmatprep.subr.bf16.mxu1 %v5113_v51  ;;  %v4803_v51 = vcombine.high %v234_v44, %v238_v45  ;;  %v318_v37 = vld [vmem:[#allocation2 + $0x770] sm:$0xff] }
 0x12f   :  { %3519 = vmatpush2.bf16.msra.mxu0 %v4984_v23  ;;  %v4674_v23 = vcombine.low %v106_v42, %v110_v43  ;;  %v178_v42 = vld [vmem:[#allocation2 + $0x310] sm:$0xff] }
 0x130   :  { %3520 = vmatprep.subr.bf16.mxu0 %v4977_v54  ;;  %v4667_v54 = vcombine.high %v98_v52, %v102_v53  ;;  %v182_v43 = vld [vmem:[#allocation2 + $0x330] sm:$0xff] }
 0x131   :  { %3562 = vmatpush2.bf16.msra.mxu1 %v5112_v24  ;;  %v4802_v24 = vcombine.low %v234_v44, %v238_v45  ;;  %v306_v44 = vld [vmem:[#allocation2 + $0x710] sm:$0xff] }
 0x132   :  { %3563 = vmatprep.subr.bf16.mxu1 %v5105_v55  ;;  %v4795_v55 = vcombine.high %v226_v56, %v230_v57  ;;  %v310_v45 = vld [vmem:[#allocation2 + $0x730] sm:$0xff] }
 0x133   :  { %3521 = vmatpush2.bf16.msra.mxu0 %v4976_v2  ;;  %v4666_v2 = vcombine.low %v98_v52, %v102_v53  ;;  %v170_v52 = vld [vmem:[#allocation2 + $0x2d0] sm:$0xff] }
 0x134   :  { %3522 = vmatprep.subr.bf16.mxu0 %v4969_v4  ;;  %v4659_v4 = vcombine.high %v90_v61, %v94_v62  ;;  %v174_v53 = vld [vmem:[#allocation2 + $0x2f0] sm:$0xff] }
 0x135   :  { %3564 = vmatpush2.bf16.msra.mxu1 %v5104_v3  ;;  %v4794_v3 = vcombine.low %v226_v56, %v230_v57  ;;  %v298_v56 = vld [vmem:[#allocation2 + $0x6d0] sm:$0xff] }
 0x136   :  { %3565 = vmatprep.subr.bf16.mxu1 %v5097_v5  ;;  %v4787_v5 = vcombine.high %v218_v0, %v222_v1  ;;  %v302_v57 = vld [vmem:[#allocation2 + $0x6f0] sm:$0xff] }
 0x137   :  { %3523 = vmatpush2.bf16.msra.mxu0 %v4968_v10  ;;  %v4658_v10 = vcombine.low %v90_v61, %v94_v62  ;;  %v162_v61 = vld [vmem:[#allocation2 + $0x290] sm:$0xff] }
 0x138   :  { %3578 = vmatprep.subr.bf16.mxu0 %v4707_v12  ;;  %v4651_v12 = vcombine.high %v82_v6, %v86_v7  ;;  %v166_v62 = vld [vmem:[#allocation2 + $0x2b0] sm:$0xff] }
 0x139   :  { %3566 = vmatpush2.bf16.msra.mxu1 %v5096_v11  ;;  %v4786_v11 = vcombine.low %v218_v0, %v222_v1  ;;  %v290_v0 = vld [vmem:[#allocation2 + $0x690] sm:$0xff] }
 0x13a   :  { %3621 = vmatprep.subr.bf16.mxu1 %v4835_v13  ;;  %3525 = vmatmul.mubr.bf16.vlgmr.msra.gmra.mxu0 %v5591_v46  ;;  %v4779_v13 = vcombine.high %v210_v8, %v214_v9  ;;  %v294_v1 = vld [vmem:[#allocation2 + $0x6b0] sm:$0xff] }
 0x13b   :  { %3579 = vmatpush1.bf16.msra.mxu0 %v4706_v18  ;;  %3610 = vmatprep.mubr.bf16.mxu0 %v5531_v58  ;;  %v4650_v18 = vcombine.low %v82_v6, %v86_v7  ;;  %v154_v6 = vld [vmem:[#allocation2 + $0x250] sm:$0xff] }
 0x13c   :  { %3568 = vmatmul.mubr.bf16.vlgmr.msra.gmra.mxu1 %v5595_v47  ;;  %3580 = vmatprep.subr.bf16.mxu0 %v4699_v20  ;;  %v4771_v20 = vcombine.high %v202_v14, %v206_v15  ;;  %v158_v7 = vld [vmem:[#allocation2 + $0x270] sm:$0xff] }
 0x13d   :  { %3622 = vmatpush1.bf16.msra.mxu1 %v4834_v19  ;;  %3653 = vmatprep.mubr.bf16.mxu1 %v5545_v63  ;;  %v4778_v19 = vcombine.low %v210_v8, %v214_v9  ;;  %v282_v8 = vld [vmem:[#allocation2 + $0x650] sm:$0xff] }
 0x13e   :  { %3623 = vmatprep.subr.bf16.mxu1 %v4827_v22  ;;  %v4899_v22 = vcombine.high %v330_v16, %v334_v17  ;;  %v286_v9 = vld [vmem:[#allocation2 + $0x670] sm:$0xff] }
 0x13f   :  { %3581 = vmatpush1.bf16.msra.mxu0 %v4698_v30  ;;  %v4770_v30 = vcombine.low %v202_v14, %v206_v15  ;;  %v146_v14 = vld [vmem:[#allocation2 + $0x210] sm:$0xff] }
 0x140   :  { %3582 = vmatprep.subr.bf16.mxu0 %v4691_v31  ;;  %v4763_v31 = vcombine.high %v194_v26, %v198_v27  ;;  %v150_v15 = vld [vmem:[#allocation2 + $0x230] sm:$0xff] }
 0x141   :  { %3624 = vmatpush1.bf16.msra.mxu1 %v4826_v59  ;;  %v4898_v59 = vcombine.low %v330_v16, %v334_v17  ;;  %v274_v16 = vld [vmem:[#allocation2 + $0x610] sm:$0xff] }
 0x142   :  { %3625 = vmatprep.subr.bf16.mxu1 %v4819_v32  ;;  %v4891_v32 = vcombine.high %v322_v28, %v326_v29  ;;  %v278_v17 = vld [vmem:[#allocation2 + $0x630] sm:$0xff] }
 0x143   :  { %3583 = vmatpush1.bf16.msra.mxu0 %v4690_v38  ;;  %v4762_v38 = vcombine.low %v194_v26, %v198_v27  ;;  %v394_v26 = vld [vmem:[#allocation2 + $0x9d0] sm:$0xff] }
 0x144   :  { %3584 = vmatprep.subr.bf16.mxu0 %v4683_v40  ;;  %v4755_v40 = vcombine.high %v186_v34, %v190_v35  ;;  %v398_v27 = vld [vmem:[#allocation2 + $0x9f0] sm:$0xff] }
 0x145   :  { %3626 = vmatpush1.bf16.msra.mxu1 %v4818_v39  ;;  %v4890_v39 = vcombine.low %v322_v28, %v326_v29  ;;  %v522_v28 = vld [vmem:[#allocation2 + $0xdd0] sm:$0xff] }
 0x146   :  { %3627 = vmatprep.subr.bf16.mxu1 %v4811_v41  ;;  %v4883_v41 = vcombine.high %v314_v36, %v318_v37  ;;  %v526_v29 = vld [vmem:[#allocation2 + $0xdf0] sm:$0xff] }
 0x147   :  { %3585 = vmatpush1.bf16.msra.mxu0 %v4682_v48  ;;  %v4754_v48 = vcombine.low %v186_v34, %v190_v35  ;;  %v386_v34 = vld [vmem:[#allocation2 + $0x990] sm:$0xff] }
 0x148   :  { %3586 = vmatprep.subr.bf16.mxu0 %v4675_v50  ;;  %v4747_v50 = vcombine.high %v178_v42, %v182_v43  ;;  %v390_v35 = vld [vmem:[#allocation2 + $0x9b0] sm:$0xff] }
 0x149   :  { %3628 = vmatpush1.bf16.msra.mxu1 %v4810_v49  ;;  %v4882_v49 = vcombine.low %v314_v36, %v318_v37  ;;  %v514_v36 = vld [vmem:[#allocation2 + $0xd90] sm:$0xff] }
 0x14a   :  { %3629 = vmatprep.subr.bf16.mxu1 %v4803_v51  ;;  %v4875_v51 = vcombine.high %v306_v44, %v310_v45  ;;  %v518_v37 = vld [vmem:[#allocation2 + $0xdb0] sm:$0xff] }
 0x14b   :  { %3587 = vmatpush1.bf16.msra.mxu0 %v4674_v23  ;;  %v4746_v23 = vcombine.low %v178_v42, %v182_v43  ;;  %v378_v42 = vld [vmem:[#allocation2 + $0x950] sm:$0xff] }
 0x14c   :  { %3588 = vmatprep.subr.bf16.mxu0 %v4667_v54  ;;  %v4739_v54 = vcombine.high %v170_v52, %v174_v53  ;;  %v382_v43 = vld [vmem:[#allocation2 + $0x970] sm:$0xff] }
 0x14d   :  { %3630 = vmatpush1.bf16.msra.mxu1 %v4802_v24  ;;  %v4874_v24 = vcombine.low %v306_v44, %v310_v45  ;;  %v506_v44 = vld [vmem:[#allocation2 + $0xd50] sm:$0xff] }
 0x14e   :  { %3631 = vmatprep.subr.bf16.mxu1 %v4795_v55  ;;  %v4867_v55 = vcombine.high %v298_v56, %v302_v57  ;;  %v510_v45 = vld [vmem:[#allocation2 + $0xd70] sm:$0xff] }
 0x14f   :  { %3589 = vmatpush1.bf16.msra.mxu0 %v4666_v2  ;;  %v4738_v2 = vcombine.low %v170_v52, %v174_v53  ;;  %v370_v52 = vld [vmem:[#allocation2 + $0x910] sm:$0xff] }
 0x150   :  { %3590 = vmatprep.subr.bf16.mxu0 %v4659_v4  ;;  %v4731_v4 = vcombine.high %v162_v61, %v166_v62  ;;  %v374_v53 = vld [vmem:[#allocation2 + $0x930] sm:$0xff] }
 0x151   :  { %3632 = vmatpush1.bf16.msra.mxu1 %v4794_v3  ;;  %v4866_v3 = vcombine.low %v298_v56, %v302_v57  ;;  %v498_v56 = vld [vmem:[#allocation2 + $0xd10] sm:$0xff] }
 0x152   :  { %3633 = vmatprep.subr.bf16.mxu1 %v4787_v5  ;;  %v4859_v5 = vcombine.high %v290_v0, %v294_v1  ;;  %v502_v57 = vld [vmem:[#allocation2 + $0xd30] sm:$0xff] }
 0x153   :  { %3591 = vmatpush1.bf16.msra.mxu0 %v4658_v10  ;;  %v4730_v10 = vcombine.low %v162_v61, %v166_v62  ;;  %v362_v61 = vld [vmem:[#allocation2 + $0x8d0] sm:$0xff] }
 0x154   :  { %3592 = vmatprep.subr.bf16.mxu0 %v4651_v12  ;;  %v4723_v12 = vcombine.high %v154_v6, %v158_v7  ;;  %v366_v62 = vld [vmem:[#allocation2 + $0x8f0] sm:$0xff] }
 0x155   :  { %3634 = vmatpush1.bf16.msra.mxu1 %v4786_v11  ;;  %v4858_v11 = vcombine.low %v290_v0, %v294_v1  ;;  %v490_v0 = vld [vmem:[#allocation2 + $0xcd0] sm:$0xff] }
 0x156   :  { %3635 = vmatprep.subr.bf16.mxu1 %v4779_v13  ;;  %v4851_v13 = vcombine.high %v282_v8, %v286_v9  ;;  %v494_v1 = vld [vmem:[#allocation2 + $0xcf0] sm:$0xff] }
 0x157   :  { %3593 = vmatpush1.bf16.msra.mxu0 %v4650_v18  ;;  %v4722_v18 = vcombine.low %v154_v6, %v158_v7  ;;  %v354_v6 = vld [vmem:[#allocation2 + $0x890] sm:$0xff] }
 0x158   :  { %3594 = vmatprep.subr.bf16.mxu0 %v4771_v20  ;;  %v4715_v20 = vcombine.high %v146_v14, %v150_v15  ;;  %v358_v7 = vld [vmem:[#allocation2 + $0x8b0] sm:$0xff] }
 0x159   :  { %3636 = vmatpush1.bf16.msra.mxu1 %v4778_v19  ;;  %v4850_v19 = vcombine.low %v282_v8, %v286_v9  ;;  %v482_v8 = vld [vmem:[#allocation2 + $0xc90] sm:$0xff] }
 0x15a   :  { %3637 = vmatprep.subr.bf16.mxu1 %v4899_v22  ;;  %v4843_v22 = vcombine.high %v274_v16, %v278_v17  ;;  %v486_v9 = vld [vmem:[#allocation2 + $0xcb0] sm:$0xff] }
 0x15b   :  { %3595 = vmatpush2.bf16.msra.mxu0 %v4770_v30  ;;  %v4714_v30 = vcombine.low %v146_v14, %v150_v15  ;;  %v346_v14 = vld [vmem:[#allocation2 + $0x850] sm:$0xff] }
 0x15c   :  { %3596 = vmatprep.subr.bf16.mxu0 %v4763_v31  ;;  %v4963_v31 = vcombine.high %v394_v26, %v398_v27  ;;  %v350_v15 = vld [vmem:[#allocation2 + $0x870] sm:$0xff] }
 0x15d   :  { %3638 = vmatpush2.bf16.msra.mxu1 %v4898_v59  ;;  %v4842_v59 = vcombine.low %v274_v16, %v278_v17  ;;  %v474_v16 = vld [vmem:[#allocation2 + $0xc50] sm:$0xff] }
 0x15e   :  { %3639 = vmatprep.subr.bf16.mxu1 %v4891_v32  ;;  %v5091_v32 = vcombine.high %v522_v28, %v526_v29  ;;  %v478_v17 = vld [vmem:[#allocation2 + $0xc70] sm:$0xff] }
 0x15f   :  { %3597 = vmatpush2.bf16.msra.mxu0 %v4762_v38  ;;  %v4962_v38 = vcombine.low %v394_v26, %v398_v27  ;;  %v338_v26 = vld [vmem:[#allocation2 + $0x810] sm:$0xff] }
 0x160   :  { %3598 = vmatprep.subr.bf16.mxu0 %v4755_v40  ;;  %v4955_v40 = vcombine.high %v386_v34, %v390_v35  ;;  %v342_v27 = vld [vmem:[#allocation2 + $0x830] sm:$0xff] }
 0x161   :  { %3640 = vmatpush2.bf16.msra.mxu1 %v4890_v39  ;;  %v5090_v39 = vcombine.low %v522_v28, %v526_v29  ;;  %v466_v28 = vld [vmem:[#allocation2 + $0xc10] sm:$0xff] }
 0x162   :  { %3641 = vmatprep.subr.bf16.mxu1 %v4883_v41  ;;  %v5083_v41 = vcombine.high %v514_v36, %v518_v37  ;;  %v470_v29 = vld [vmem:[#allocation2 + $0xc30] sm:$0xff] }
 0x163   :  { %3599 = vmatpush2.bf16.msra.mxu0 %v4754_v48  ;;  %v4954_v48 = vcombine.low %v386_v34, %v390_v35  ;;  %v458_v34 = vld [vmem:[#allocation2 + $0xbd0] sm:$0xff] }
 0x164   :  { %3600 = vmatprep.subr.bf16.mxu0 %v4747_v50  ;;  %v4947_v50 = vcombine.high %v378_v42, %v382_v43  ;;  %v462_v35 = vld [vmem:[#allocation2 + $0xbf0] sm:$0xff] }
 0x165   :  { %3642 = vmatpush2.bf16.msra.mxu1 %v4882_v49  ;;  %v5082_v49 = vcombine.low %v514_v36, %v518_v37  ;;  %v586_v36 = vld [vmem:[#allocation2 + $0xfd0] sm:$0xff] }
 0x166   :  { %3643 = vmatprep.subr.bf16.mxu1 %v4875_v51  ;;  %v5075_v51 = vcombine.high %v506_v44, %v510_v45  ;;  %v590_v37 = vld [vmem:[#allocation2 + $0xff0] sm:$0xff] }
 0x167   :  { %3601 = vmatpush2.bf16.msra.mxu0 %v4746_v23  ;;  %v4946_v23 = vcombine.low %v378_v42, %v382_v43  ;;  %v450_v42 = vld [vmem:[#allocation2 + $0xb90] sm:$0xff] }
 0x168   :  { %3602 = vmatprep.subr.bf16.mxu0 %v4739_v54  ;;  %v4939_v54 = vcombine.high %v370_v52, %v374_v53  ;;  %v454_v43 = vld [vmem:[#allocation2 + $0xbb0] sm:$0xff] }
 0x169   :  { %3644 = vmatpush2.bf16.msra.mxu1 %v4874_v24  ;;  %v5074_v24 = vcombine.low %v506_v44, %v510_v45  ;;  %v578_v44 = vld [vmem:[#allocation2 + $0xf90] sm:$0xff] }
 0x16a   :  { %3645 = vmatprep.subr.bf16.mxu1 %v4867_v55  ;;  %v5067_v55 = vcombine.high %v498_v56, %v502_v57  ;;  %v582_v45 = vld [vmem:[#allocation2 + $0xfb0] sm:$0xff] }
 0x16b   :  { %3603 = vmatpush2.bf16.msra.mxu0 %v4738_v2  ;;  %v4938_v2 = vcombine.low %v370_v52, %v374_v53  ;;  %v442_v52 = vld [vmem:[#allocation2 + $0xb50] sm:$0xff] }
 0x16c   :  { %3604 = vmatprep.subr.bf16.mxu0 %v4731_v4  ;;  %v4931_v4 = vcombine.high %v362_v61, %v366_v62  ;;  %v446_v53 = vld [vmem:[#allocation2 + $0xb70] sm:$0xff] }
 0x16d   :  { %3646 = vmatpush2.bf16.msra.mxu1 %v4866_v3  ;;  %v5066_v3 = vcombine.low %v498_v56, %v502_v57  ;;  %v570_v56 = vld [vmem:[#allocation2 + $0xf50] sm:$0xff] }
 0x16e   :  { %3647 = vmatprep.subr.bf16.mxu1 %v4859_v5  ;;  %v5059_v5 = vcombine.high %v490_v0, %v494_v1  ;;  %v574_v57 = vld [vmem:[#allocation2 + $0xf70] sm:$0xff] }
 0x16f   :  { %3605 = vmatpush2.bf16.msra.mxu0 %v4730_v10  ;;  %v4930_v10 = vcombine.low %v362_v61, %v366_v62  ;;  %v434_v61 = vld [vmem:[#allocation2 + $0xb10] sm:$0xff] }
 0x170   :  { %3606 = vmatprep.subr.bf16.mxu0 %v4723_v12  ;;  %v4923_v12 = vcombine.high %v354_v6, %v358_v7  ;;  %v438_v62 = vld [vmem:[#allocation2 + $0xb30] sm:$0xff] }
 0x171   :  { %3648 = vmatpush2.bf16.msra.mxu1 %v4858_v11  ;;  %v5058_v11 = vcombine.low %v490_v0, %v494_v1  ;;  %v562_v0 = vld [vmem:[#allocation2 + $0xf10] sm:$0xff] }
 0x172   :  { %3649 = vmatprep.subr.bf16.mxu1 %v4851_v13  ;;  %v5051_v13 = vcombine.high %v482_v8, %v486_v9  ;;  %v566_v1 = vld [vmem:[#allocation2 + $0xf30] sm:$0xff] }
 0x173   :  { %3607 = vmatpush2.bf16.msra.mxu0 %v4722_v18  ;;  %v4922_v18 = vcombine.low %v354_v6, %v358_v7  ;;  %v426_v6 = vld [vmem:[#allocation2 + $0xad0] sm:$0xff] }
 0x174   :  { %3608 = vmatprep.subr.bf16.mxu0 %v4715_v20  ;;  %v4915_v20 = vcombine.high %v346_v14, %v350_v15  ;;  %v430_v7 = vld [vmem:[#allocation2 + $0xaf0] sm:$0xff] }
 0x175   :  { %3650 = vmatpush2.bf16.msra.mxu1 %v4850_v19  ;;  %v5050_v19 = vcombine.low %v482_v8, %v486_v9  ;;  %v554_v8 = vld [vmem:[#allocation2 + $0xed0] sm:$0xff] }
 0x176   :  { %3651 = vmatprep.subr.bf16.mxu1 %v4843_v22  ;;  %v5043_v22 = vcombine.high %v474_v16, %v478_v17  ;;  %v558_v9 = vld [vmem:[#allocation2 + $0xef0] sm:$0xff] }
 0x177   :  { %3609 = vmatpush2.bf16.msra.mxu0 %v4714_v30  ;;  %v4914_v30 = vcombine.low %v346_v14, %v350_v15  ;;  %v418_v14 = vld [vmem:[#allocation2 + $0xa90] sm:$0xff] }
 0x178   :  { %3664 = vmatprep.subr.bf16.mxu0 %v4963_v31  ;;  %v4907_v31 = vcombine.high %v338_v26, %v342_v27  ;;  %v422_v15 = vld [vmem:[#allocation2 + $0xab0] sm:$0xff] }
 0x179   :  { %3652 = vmatpush2.bf16.msra.mxu1 %v4842_v59  ;;  %v5042_v59 = vcombine.low %v474_v16, %v478_v17  ;;  %v546_v16 = vld [vmem:[#allocation2 + $0xe90] sm:$0xff] }
 0x17a   :  { %3707 = vmatprep.subr.bf16.mxu1 %v5091_v32  ;;  %3611 = vmatmul.mubr.bf16.vlgmr.msra.gmra.mxu0 %v5551_v21  ;;  %v5035_v32 = vcombine.high %v466_v28, %v470_v29  ;;  %v550_v17 = vld [vmem:[#allocation2 + $0xeb0] sm:$0xff] }
 0x17b   :  { %3665 = vmatpush1.bf16.msra.mxu0 %v4962_v38  ;;  %3696 = vmatprep.mubr.bf16.mxu0 %v5579_v60  ;;  %v4906_v38 = vcombine.low %v338_v26, %v342_v27  ;;  %v410_v26 = vld [vmem:[#allocation2 + $0xa50] sm:$0xff] }
 0x17c   :  { %3654 = vmatmul.mubr.bf16.vlgmr.msra.gmra.mxu1 %v5565_v25  ;;  %3666 = vmatprep.subr.bf16.mxu0 %v4955_v40  ;;  %v5027_v40 = vcombine.high %v458_v34, %v462_v35  ;;  %v414_v27 = vld [vmem:[#allocation2 + $0xa70] sm:$0xff] }
 0x17d   :  { %3708 = vmatpush1.bf16.msra.mxu1 %v5090_v39  ;;  %3739 = vmatprep.mubr.bf16.mxu1 %v5584_v33  ;;  %v5034_v39 = vcombine.low %v466_v28, %v470_v29  ;;  %v538_v28 = vld [vmem:[#allocation2 + $0xe50] sm:$0xff] }
 0x17e   :  { %3709 = vmatprep.subr.bf16.mxu1 %v5083_v41  ;;  %v5155_v41 = vcombine.high %v586_v36, %v590_v37  ;;  %v542_v29 = vld [vmem:[#allocation2 + $0xe70] sm:$0xff] }
 0x17f   :  { %3667 = vmatpush1.bf16.msra.mxu0 %v4954_v48  ;;  %v5026_v48 = vcombine.low %v458_v34, %v462_v35  ;;  %v402_v34 = vld [vmem:[#allocation2 + $0xa10] sm:$0xff] }
 0x180   :  { %3668 = vmatprep.subr.bf16.mxu0 %v4947_v50  ;;  %v5019_v50 = vcombine.high %v450_v42, %v454_v43  ;;  %v406_v35 = vld [vmem:[#allocation2 + $0xa30] sm:$0xff] }
 0x181   :  { %3710 = vmatpush1.bf16.msra.mxu1 %v5082_v49  ;;  %v5154_v49 = vcombine.low %v586_v36, %v590_v37  ;;  %v530_v36 = vld [vmem:[#allocation2 + $0xe10] sm:$0xff] }
 0x182   :  { %3711 = vmatprep.subr.bf16.mxu1 %v5075_v51  ;;  %v5147_v51 = vcombine.high %v578_v44, %v582_v45  ;;  %v534_v37 = vld [vmem:[#allocation2 + $0xe30] sm:$0xff] }
 0x183   :  { %3669 = vmatpush1.bf16.msra.mxu0 %v4946_v23  ;;  %v5018_v23 = vcombine.low %v450_v42, %v454_v43  ;;  %v139_v42 = vld [vmem:[#allocation2 + $0x1d8] sm:$0xff] }
 0x184   :  { %3670 = vmatprep.subr.bf16.mxu0 %v4939_v54  ;;  %v5011_v54 = vcombine.high %v442_v52, %v446_v53  ;;  %v143_v43 = vld [vmem:[#allocation2 + $0x1f8] sm:$0xff] }
 0x185   :  { %3712 = vmatpush1.bf16.msra.mxu1 %v5074_v24  ;;  %v5146_v24 = vcombine.low %v578_v44, %v582_v45  ;;  %v267_v44 = vld [vmem:[#allocation2 + $0x5d8] sm:$0xff] }
 0x186   :  { %3713 = vmatprep.subr.bf16.mxu1 %v5067_v55  ;;  %v5139_v55 = vcombine.high %v570_v56, %v574_v57  ;;  %v271_v45 = vld [vmem:[#allocation2 + $0x5f8] sm:$0xff] }
 0x187   :  { %3671 = vmatpush1.bf16.msra.mxu0 %v4938_v2  ;;  %v5010_v2 = vcombine.low %v442_v52, %v446_v53  ;;  %v131_v52 = vld [vmem:[#allocation2 + $0x198] sm:$0xff] }
 0x188   :  { %3672 = vmatprep.subr.bf16.mxu0 %v4931_v4  ;;  %v5003_v4 = vcombine.high %v434_v61, %v438_v62  ;;  %v135_v53 = vld [vmem:[#allocation2 + $0x1b8] sm:$0xff] }
 0x189   :  { %3714 = vmatpush1.bf16.msra.mxu1 %v5066_v3  ;;  %v5138_v3 = vcombine.low %v570_v56, %v574_v57  ;;  %v259_v56 = vld [vmem:[#allocation2 + $0x598] sm:$0xff] }
 0x18a   :  { %3715 = vmatprep.subr.bf16.mxu1 %v5059_v5  ;;  %v5131_v5 = vcombine.high %v562_v0, %v566_v1  ;;  %v263_v57 = vld [vmem:[#allocation2 + $0x5b8] sm:$0xff] }
 0x18b   :  { %3673 = vmatpush1.bf16.msra.mxu0 %v4930_v10  ;;  %v5002_v10 = vcombine.low %v434_v61, %v438_v62  ;;  %v123_v61 = vld [vmem:[#allocation2 + $0x158] sm:$0xff] }
 0x18c   :  { %3674 = vmatprep.subr.bf16.mxu0 %v4923_v12  ;;  %v4995_v12 = vcombine.high %v426_v6, %v430_v7  ;;  %v127_v62 = vld [vmem:[#allocation2 + $0x178] sm:$0xff] }
 0x18d   :  { %3716 = vmatpush1.bf16.msra.mxu1 %v5058_v11  ;;  %v5130_v11 = vcombine.low %v562_v0, %v566_v1  ;;  %v251_v0 = vld [vmem:[#allocation2 + $0x558] sm:$0xff] }
 0x18e   :  { %3717 = vmatprep.subr.bf16.mxu1 %v5051_v13  ;;  %v5123_v13 = vcombine.high %v554_v8, %v558_v9  ;;  %v255_v1 = vld [vmem:[#allocation2 + $0x578] sm:$0xff] }
 0x18f   :  { %3675 = vmatpush1.bf16.msra.mxu0 %v4922_v18  ;;  %v4994_v18 = vcombine.low %v426_v6, %v430_v7  ;;  %v115_v6 = vld [vmem:[#allocation2 + $0x118] sm:$0xff] }
 0x190   :  { %3676 = vmatprep.subr.bf16.mxu0 %v4915_v20  ;;  %v4987_v20 = vcombine.high %v418_v14, %v422_v15  ;;  %v119_v7 = vld [vmem:[#allocation2 + $0x138] sm:$0xff] }
 0x191   :  { %3718 = vmatpush1.bf16.msra.mxu1 %v5050_v19  ;;  %v5122_v19 = vcombine.low %v554_v8, %v558_v9  ;;  %v243_v8 = vld [vmem:[#allocation2 + $0x518] sm:$0xff] }
 0x192   :  { %3719 = vmatprep.subr.bf16.mxu1 %v5043_v22  ;;  %v5115_v22 = vcombine.high %v546_v16, %v550_v17  ;;  %v247_v9 = vld [vmem:[#allocation2 + $0x538] sm:$0xff] }
 0x193   :  { %3677 = vmatpush1.bf16.msra.mxu0 %v4914_v30  ;;  %v4986_v30 = vcombine.low %v418_v14, %v422_v15  ;;  %v107_v14 = vld [vmem:[#allocation2 + $0xd8] sm:$0xff] }
 0x194   :  { %3678 = vmatprep.subr.bf16.mxu0 %v4907_v31  ;;  %v4979_v31 = vcombine.high %v410_v26, %v414_v27  ;;  %v111_v15 = vld [vmem:[#allocation2 + $0xf8] sm:$0xff] }
 0x195   :  { %3720 = vmatpush1.bf16.msra.mxu1 %v5042_v59  ;;  %v5114_v59 = vcombine.low %v546_v16, %v550_v17  ;;  %v235_v16 = vld [vmem:[#allocation2 + $0x4d8] sm:$0xff] }
 0x196   :  { %3721 = vmatprep.subr.bf16.mxu1 %v5035_v32  ;;  %v5107_v32 = vcombine.high %v538_v28, %v542_v29  ;;  %v239_v17 = vld [vmem:[#allocation2 + $0x4f8] sm:$0xff] }
 0x197   :  { %3679 = vmatpush1.bf16.msra.mxu0 %v4906_v38  ;;  %v4978_v38 = vcombine.low %v410_v26, %v414_v27  ;;  %v227_v26 = vld [vmem:[#allocation2 + $0x498] sm:$0xff] }
 0x198   :  { %3680 = vmatprep.subr.bf16.mxu0 %v5027_v40  ;;  %v4971_v40 = vcombine.high %v402_v34, %v406_v35  ;;  %v231_v27 = vld [vmem:[#allocation2 + $0x4b8] sm:$0xff] }
 0x199   :  { %3722 = vmatpush1.bf16.msra.mxu1 %v5034_v39  ;;  %v5106_v39 = vcombine.low %v538_v28, %v542_v29  ;;  %v4676_v28 = vcombine.low %v107_v14, %v111_v15  ;;  %v4804_v29 = vcombine.low %v235_v16, %v239_v17 }
 0x19a   :  { %3723 = vmatprep.subr.bf16.mxu1 %v5155_v41  ;;  %v5099_v41 = vcombine.high %v530_v36, %v534_v37 }
 0x19b   :  { %3681 = vmatpush2.bf16.msra.mxu0 %v5026_v48  ;;  %v4970_v48 = vcombine.low %v402_v34, %v406_v35  ;;  %v219_v34 = vld [vmem:[#allocation2 + $0x458] sm:$0xff] }
 0x19c   :  { %3682 = vmatprep.subr.bf16.mxu0 %v5019_v50  ;;  %v4709_v50 = vcombine.high %v139_v42, %v143_v43  ;;  %v223_v35 = vld [vmem:[#allocation2 + $0x478] sm:$0xff] }
 0x19d   :  { %3724 = vmatpush2.bf16.msra.mxu1 %v5154_v49  ;;  %v5098_v49 = vcombine.low %v530_v36, %v534_v37  ;;  %v4796_v37 = vcombine.low %v227_v26, %v231_v27 }
 0x19e   :  { %3725 = vmatprep.subr.bf16.mxu1 %v5147_v51  ;;  %v4837_v51 = vcombine.high %v267_v44, %v271_v45 }
 0x19f   :  { %3683 = vmatpush2.bf16.msra.mxu0 %v5018_v23  ;;  %v4708_v23 = vcombine.low %v139_v42, %v143_v43  ;;  %v211_v42 = vld [vmem:[#allocation2 + $0x418] sm:$0xff] }
 0x1a0   :  { %3684 = vmatprep.subr.bf16.mxu0 %v5011_v54  ;;  %v4701_v54 = vcombine.high %v131_v52, %v135_v53  ;;  %v215_v43 = vld [vmem:[#allocation2 + $0x438] sm:$0xff] }
 0x1a1   :  { %3726 = vmatpush2.bf16.msra.mxu1 %v5146_v24  ;;  %v4836_v24 = vcombine.low %v267_v44, %v271_v45  ;;  %v4788_v45 = vcombine.low %v219_v34, %v223_v35 }
 0x1a2   :  { %3727 = vmatprep.subr.bf16.mxu1 %v5139_v55  ;;  %v4829_v55 = vcombine.high %v259_v56, %v263_v57 }
 0x1a3   :  { %3685 = vmatpush2.bf16.msra.mxu0 %v5010_v2  ;;  %v4700_v2 = vcombine.low %v131_v52, %v135_v53  ;;  %v331_v52 = vld [vmem:[#allocation2 + $0x7d8] sm:$0xff] }
 0x1a4   :  { %3686 = vmatprep.subr.bf16.mxu0 %v5003_v4  ;;  %v4693_v4 = vcombine.high %v123_v61, %v127_v62  ;;  %v335_v53 = vld [vmem:[#allocation2 + $0x7f8] sm:$0xff] }
 0x1a5   :  { %3728 = vmatpush2.bf16.msra.mxu1 %v5138_v3  ;;  %v4828_v3 = vcombine.low %v259_v56, %v263_v57  ;;  %v4780_v57 = vcombine.low %v211_v42, %v215_v43 }
 0x1a6   :  { %3729 = vmatprep.subr.bf16.mxu1 %v5131_v5  ;;  %v4821_v5 = vcombine.high %v251_v0, %v255_v1 }
 0x1a7   :  { %3687 = vmatpush2.bf16.msra.mxu0 %v5002_v10  ;;  %v4692_v10 = vcombine.low %v123_v61, %v127_v62  ;;  %v323_v61 = vld [vmem:[#allocation2 + $0x798] sm:$0xff] }
 0x1a8   :  { %3688 = vmatprep.subr.bf16.mxu0 %v4995_v12  ;;  %v4685_v12 = vcombine.high %v115_v6, %v119_v7  ;;  %v327_v62 = vld [vmem:[#allocation2 + $0x7b8] sm:$0xff] }
 0x1a9   :  { %3730 = vmatpush2.bf16.msra.mxu1 %v5130_v11  ;;  %v4820_v11 = vcombine.low %v251_v0, %v255_v1  ;;  %v4900_v1 = vcombine.low %v331_v52, %v335_v53 }
 0x1aa   :  { %3731 = vmatprep.subr.bf16.mxu1 %v5123_v13  ;;  %v4813_v13 = vcombine.high %v243_v8, %v247_v9 }
 0x1ab   :  { %3689 = vmatpush2.bf16.msra.mxu0 %v4994_v18  ;;  %v4684_v18 = vcombine.low %v115_v6, %v119_v7  ;;  %v315_v6 = vld [vmem:[#allocation2 + $0x758] sm:$0xff] }
 0x1ac   :  { %3690 = vmatprep.subr.bf16.mxu0 %v4987_v20  ;;  %v99_v20 = vld [vmem:[#allocation2 + $0x98] sm:$0xff] }
 0x1ad   :  { %3732 = vmatpush2.bf16.msra.mxu1 %v5122_v19  ;;  %v4677_v19 = vcombine.high %v107_v14, %v111_v15  ;;  %v319_v7 = vld [vmem:[#allocation2 + $0x778] sm:$0xff] }
 0x1ae   :  { %3733 = vmatprep.subr.bf16.mxu1 %v5115_v22  ;;  %v103_v22 = vld [vmem:[#allocation2 + $0xb8] sm:$0xff] }
 0x1af   :  { %3691 = vmatpush2.bf16.msra.mxu0 %v4986_v30  ;;  %v4669_v30 = vcombine.high %v99_v20, %v103_v22  ;;  %v4668_v36 = vcombine.low %v99_v20, %v103_v22  ;;  %v307_v14 = vld [vmem:[#allocation2 + $0x718] sm:$0xff] }
 0x1b0   :  { %3692 = vmatprep.subr.bf16.mxu0 %v4979_v31  ;;  %v91_v31 = vld [vmem:[#allocation2 + $0x58] sm:$0xff] }
 0x1b1   :  { %3734 = vmatpush2.bf16.msra.mxu1 %v5114_v59  ;;  %v4797_v59 = vcombine.high %v227_v26, %v231_v27  ;;  %v311_v15 = vld [vmem:[#allocation2 + $0x738] sm:$0xff] }
 0x1b2   :  { %3735 = vmatprep.subr.bf16.mxu1 %v5107_v32  ;;  %v95_v32 = vld [vmem:[#allocation2 + $0x78] sm:$0xff]  ;;  %v4876_v27 = vcombine.low %v307_v14, %v311_v15 }
 0x1b3   :  { %3693 = vmatpush2.bf16.msra.mxu0 %v4978_v38  ;;  %v4661_v38 = vcombine.high %v91_v31, %v95_v32  ;;  %v4660_v44 = vcombine.low %v91_v31, %v95_v32  ;;  %v299_v20 = vld [vmem:[#allocation2 + $0x6d8] sm:$0xff] }
 0x1b4   :  { %3694 = vmatprep.subr.bf16.mxu0 %v4971_v40  ;;  %v83_v40 = vld [vmem:[#allocation2 + $0x18] sm:$0xff] }
 0x1b5   :  { %3736 = vmatpush2.bf16.msra.mxu1 %v5106_v39  ;;  %v4789_v39 = vcombine.high %v219_v34, %v223_v35  ;;  %v303_v22 = vld [vmem:[#allocation2 + $0x6f8] sm:$0xff] }
 0x1b6   :  { %3737 = vmatprep.subr.bf16.mxu1 %v5099_v41  ;;  %v87_v41 = vld [vmem:[#allocation2 + $0x38] sm:$0xff]  ;;  %v4868_v35 = vcombine.low %v299_v20, %v303_v22 }
 0x1b7   :  { %3695 = vmatpush2.bf16.msra.mxu0 %v4970_v48  ;;  %v4653_v48 = vcombine.high %v83_v40, %v87_v41  ;;  %v4652_v56 = vcombine.low %v83_v40, %v87_v41  ;;  %v291_v31 = vld [vmem:[#allocation2 + $0x698] sm:$0xff] }
 0x1b8   :  { %3750 = vmatprep.subr.bf16.mxu0 %v4709_v50  ;;  %v203_v50 = vld [vmem:[#allocation2 + $0x3d8] sm:$0xff] }
 0x1b9   :  { %3738 = vmatpush2.bf16.msra.mxu1 %v5098_v49  ;;  %v4781_v49 = vcombine.high %v211_v42, %v215_v43  ;;  %v295_v32 = vld [vmem:[#allocation2 + $0x6b8] sm:$0xff] }
 0x1ba   :  { %3793 = vmatprep.subr.bf16.mxu1 %v4837_v51  ;;  %3697 = vmatmul.mubr.bf16.vlgmr.msra.gmra.mxu0 %v5591_v46  ;;  %v207_v51 = vld [vmem:[#allocation2 + $0x3f8] sm:$0xff]  ;;  %v4860_v43 = vcombine.low %v291_v31, %v295_v32 }
 0x1bb   :  { %3751 = vmatpush1.bf16.msra.mxu0 %v4708_v23  ;;  %3782 = vmatprep.mubr.bf16.mxu0 %v5531_v58  ;;  %v4812_v58 = vcombine.low %v243_v8, %v247_v9  ;;  %v4773_v23 = vcombine.high %v203_v50, %v207_v51  ;;  %v4772_v0 = vcombine.low %v203_v50, %v207_v51  ;;  %v283_v40 = vld [vmem:[#allocation2 + $0x658] sm:$0xff] }
 0x1bc   :  { %3740 = vmatmul.mubr.bf16.vlgmr.msra.gmra.mxu1 %v5595_v47  ;;  %3752 = vmatprep.subr.bf16.mxu0 %v4701_v54  ;;  %v195_v54 = vld [vmem:[#allocation2 + $0x398] sm:$0xff]  ;;  %v4892_v9 = vcombine.low %v323_v61, %v327_v62 }
 0x1bd   :  { %3794 = vmatpush1.bf16.msra.mxu1 %v4836_v24  ;;  %3825 = vmatprep.mubr.bf16.mxu1 %v5545_v63  ;;  %v4805_v63 = vcombine.high %v235_v16, %v239_v17  ;;  %v4901_v24 = vcombine.high %v331_v52, %v335_v53  ;;  %v4884_v17 = vcombine.low %v315_v6, %v319_v7  ;;  %v287_v41 = vld [vmem:[#allocation2 + $0x678] sm:$0xff] }
 0x1be   :  { %3795 = vmatprep.subr.bf16.mxu1 %v4829_v55  ;;  %v199_v55 = vld [vmem:[#allocation2 + $0x3b8] sm:$0xff]  ;;  %v4852_v53 = vcombine.low %v283_v40, %v287_v41 }
 0x1bf   :  { %3753 = vmatpush1.bf16.msra.mxu0 %v4700_v2  ;;  %v4765_v2 = vcombine.high %v195_v54, %v199_v55  ;;  %v4764_v8 = vcombine.low %v195_v54, %v199_v55  ;;  %v275_v50 = vld [vmem:[#allocation2 + $0x618] sm:$0xff] }
 0x1c0   :  { %3754 = vmatprep.subr.bf16.mxu0 %v4693_v4  ;;  %v187_v4 = vld [vmem:[#allocation2 + $0x358] sm:$0xff] }
 0x1c1   :  { %3796 = vmatpush1.bf16.msra.mxu1 %v4828_v3  ;;  %v4893_v3 = vcombine.high %v323_v61, %v327_v62  ;;  %v279_v51 = vld [vmem:[#allocation2 + $0x638] sm:$0xff] }
 0x1c2   :  { %3797 = vmatprep.subr.bf16.mxu1 %v4821_v5  ;;  %v191_v5 = vld [vmem:[#allocation2 + $0x378] sm:$0xff]  ;;  %v4844_v62 = vcombine.low %v275_v50, %v279_v51 }
 0x1c3   :  { %3755 = vmatpush1.bf16.msra.mxu0 %v4692_v10  ;;  %v4757_v10 = vcombine.high %v187_v4, %v191_v5  ;;  %v4756_v16 = vcombine.low %v187_v4, %v191_v5  ;;  %v523_v54 = vld [vmem:[#allocation2 + $0xdd8] sm:$0xff]  ;;  %v5617_v4 = vpop.f32.mrf.mxu0 }
 0x1c4   :  { %3756 = vmatprep.subr.bf16.mxu0 %v4685_v12  ;;  %v179_v12 = vld [vmem:[#allocation2 + $0x318] sm:$0xff] }
 0x1c5   :  { %3798 = vmatpush1.bf16.msra.mxu1 %v4820_v11  ;;  %v4885_v11 = vcombine.high %v315_v6, %v319_v7  ;;  %v527_v55 = vld [vmem:[#allocation2 + $0xdf8] sm:$0xff] }
 0x1c6   :  { %3799 = vmatprep.subr.bf16.mxu1 %v4813_v13  ;;  %v183_v13 = vld [vmem:[#allocation2 + $0x338] sm:$0xff] }
 0x1c7   :  { %3757 = vmatpush1.bf16.msra.mxu0 %v4684_v18  ;;  %v4749_v18 = vcombine.high %v179_v12, %v183_v13  ;;  %v4748_v26 = vcombine.low %v179_v12, %v183_v13  ;;  %v515_v5 = vld [vmem:[#allocation2 + $0xd98] sm:$0xff]  ;;  %v5619_v13 = vpop.f32.mrf.mxu0 }
 0x1c8   :  { %3758 = vmatprep.subr.bf16.mxu0 %v4677_v19  ;;  %v171_v19 = vld [vmem:[#allocation2 + $0x2d8] sm:$0xff] }
 0x1c9   :  { %3800 = vmatpush1.bf16.msra.mxu1 %v4812_v58  ;;  %v4877_v58 = vcombine.high %v307_v14, %v311_v15  ;;  %v519_v6 = vld [vmem:[#allocation2 + $0xdb8] sm:$0xff] }
 0x1ca   :  { %3801 = vmatprep.subr.bf16.mxu1 %v4805_v63  ;;  %v175_v63 = vld [vmem:[#allocation2 + $0x2f8] sm:$0xff] }
 0x1cb   :  { %3759 = vmatpush1.bf16.msra.mxu0 %v4676_v28  ;;  %v4741_v28 = vcombine.high %v171_v19, %v175_v63  ;;  %v4740_v34 = vcombine.low %v171_v19, %v175_v63  ;;  %v383_v12 = vld [vmem:[#allocation2 + $0x978] sm:$0xff] }
 0x1cc   :  { %3760 = vmatprep.subr.bf16.mxu0 %v4669_v30  ;;  %v163_v30 = vld [vmem:[#allocation2 + $0x298] sm:$0xff] }
 0x1cd   :  { %3802 = vmatpush1.bf16.msra.mxu1 %v4804_v29  ;;  %v4869_v29 = vcombine.high %v299_v20, %v303_v22  ;;  %v507_v14 = vld [vmem:[#allocation2 + $0xd58] sm:$0xff]  ;;  %v5626_v22 = vpop.f32.mrf.mxu0 }
 0x1ce   :  { %3803 = vmatprep.subr.bf16.mxu1 %v4797_v59  ;;  %v167_v59 = vld [vmem:[#allocation2 + $0x2b8] sm:$0xff] }
 0x1cf   :  { %3761 = vmatpush1.bf16.msra.mxu0 %v4668_v36  ;;  %v4733_v36 = vcombine.high %v163_v30, %v167_v59  ;;  %v4732_v42 = vcombine.low %v163_v30, %v167_v59  ;;  %v511_v15 = vld [vmem:[#allocation2 + $0xd78] sm:$0xff] }
 0x1d0   :  { %3762 = vmatprep.subr.bf16.mxu0 %v4661_v38  ;;  %v155_v38 = vld [vmem:[#allocation2 + $0x258] sm:$0xff]  ;;  %v5077_v19 = vcombine.high %v507_v14, %v511_v15 }
 0x1d1   :  { %3804 = vmatpush1.bf16.msra.mxu1 %v4796_v37  ;;  %v4861_v37 = vcombine.high %v291_v31, %v295_v32  ;;  %v371_v63 = vld [vmem:[#allocation2 + $0x918] sm:$0xff]  ;;  %v5631_v32 = vpop.f32.mrf.mxu0 }
 0x1d2   :  { %3805 = vmatprep.subr.bf16.mxu1 %v4789_v39  ;;  %v159_v39 = vld [vmem:[#allocation2 + $0x278] sm:$0xff] }
 0x1d3   :  { %3763 = vmatpush1.bf16.msra.mxu0 %v4660_v44  ;;  %v4725_v44 = vcombine.high %v155_v38, %v159_v39  ;;  %v4724_v52 = vcombine.low %v155_v38, %v159_v39  ;;  %v375_v20 = vld [vmem:[#allocation2 + $0x938] sm:$0xff] }
 0x1d4   :  { %3764 = vmatprep.subr.bf16.mxu0 %v4653_v48  ;;  %v147_v48 = vld [vmem:[#allocation2 + $0x218] sm:$0xff] }
 0x1d5   :  { %3806 = vmatpush1.bf16.msra.mxu1 %v4788_v45  ;;  %v4853_v45 = vcombine.high %v283_v40, %v287_v41  ;;  %v363_v59 = vld [vmem:[#allocation2 + $0x8d8] sm:$0xff] }
 0x1d6   :  { %3807 = vmatprep.subr.bf16.mxu1 %v4781_v49  ;;  %v151_v49 = vld [vmem:[#allocation2 + $0x238] sm:$0xff] }
 0x1d7   :  { %3765 = vmatpush1.bf16.msra.mxu0 %v4652_v56  ;;  %v4717_v56 = vcombine.high %v147_v48, %v151_v49  ;;  %v4716_v61 = vcombine.low %v147_v48, %v151_v49  ;;  %v367_v31 = vld [vmem:[#allocation2 + $0x8f8] sm:$0xff] }
 0x1d8   :  { %3766 = vmatprep.subr.bf16.mxu0 %v4773_v23  ;;  %v395_v23 = vld [vmem:[#allocation2 + $0x9d8] sm:$0xff]  ;;  %v4933_v38 = vcombine.high %v363_v59, %v367_v31 }
 0x1d9   :  { %3808 = vmatpush1.bf16.msra.mxu1 %v4780_v57  ;;  %v4845_v57 = vcombine.high %v275_v50, %v279_v51  ;;  %v355_v40 = vld [vmem:[#allocation2 + $0x898] sm:$0xff] }
 0x1da   :  { %3809 = vmatprep.subr.bf16.mxu1 %v4901_v24  ;;  %v399_v24 = vld [vmem:[#allocation2 + $0x9f8] sm:$0xff] }
 0x1db   :  { %3767 = vmatpush2.bf16.msra.mxu0 %v4772_v0  ;;  %v4965_v0 = vcombine.high %v395_v23, %v399_v24  ;;  %v4964_v7 = vcombine.low %v395_v23, %v399_v24  ;;  %v359_v41 = vld [vmem:[#allocation2 + $0x8b8] sm:$0xff] }
 0x1dc   :  { %3768 = vmatprep.subr.bf16.mxu0 %v4765_v2  ;;  %v387_v2 = vld [vmem:[#allocation2 + $0x998] sm:$0xff]  ;;  %v4925_v50 = vcombine.high %v355_v40, %v359_v41  ;;  %v4924_v24 = vcombine.low %v355_v40, %v359_v41 }
 0x1dd   :  { %3810 = vmatpush2.bf16.msra.mxu1 %v4900_v1  ;;  %v5093_v1 = vcombine.high %v523_v54, %v527_v55  ;;  %v479_v23 = vld [vmem:[#allocation2 + $0xc78] sm:$0xff] }
 0x1de   :  { %3811 = vmatprep.subr.bf16.mxu1 %v4893_v3  ;;  %v391_v3 = vld [vmem:[#allocation2 + $0x9b8] sm:$0xff] }
 0x1df   :  { %3769 = vmatpush2.bf16.msra.mxu0 %v4764_v8  ;;  %v5092_v8 = vcombine.low %v523_v54, %v527_v55  ;;  %v571_v41 = vld [vmem:[#allocation2 + $0xf58] sm:$0xff] }
 0x1e0   :  { %3770 = vmatprep.subr.bf16.mxu0 %v4757_v10  ;;  %v5085_v10 = vcombine.high %v515_v5, %v519_v6 }
 0x1e1   :  { %3812 = vmatpush2.bf16.msra.mxu1 %v4892_v9  ;;  %v4957_v9 = vcombine.high %v387_v2, %v391_v3 }
 0x1e2   :  { %3813 = vmatprep.subr.bf16.mxu1 %v4885_v11  ;;  %v379_v11 = vld [vmem:[#allocation2 + $0x958] sm:$0xff] }
 0x1e3   :  { %3771 = vmatpush2.bf16.msra.mxu0 %v4756_v16  ;;  %v4956_v16 = vcombine.low %v387_v2, %v391_v3  ;;  %v467_v3 = vld [vmem:[#allocation2 + $0xc18] sm:$0xff] }
 0x1e4   :  { %3772 = vmatprep.subr.bf16.mxu0 %v4749_v18  ;;  %v5084_v18 = vcombine.low %v515_v5, %v519_v6  ;;  %v471_v5 = vld [vmem:[#allocation2 + $0xc38] sm:$0xff] }
 0x1e5   :  { %3814 = vmatpush2.bf16.msra.mxu1 %v4884_v17  ;;  %v5623_v17 = vpop.f32.mrf.mxu1 }
 0x1e6   :  { %3815 = vmatprep.subr.bf16.mxu1 %v4877_v58  ;;  %v4949_v58 = vcombine.high %v379_v11, %v383_v12 }
 0x1e7   :  { %3773 = vmatpush2.bf16.msra.mxu0 %v4748_v26  ;;  %v503_v26 = vld [vmem:[#allocation2 + $0xd38] sm:$0xff] }
 0x1e8   :  { %3774 = vmatprep.subr.bf16.mxu0 %v4741_v28  ;;  %v5076_v28 = vcombine.low %v507_v14, %v511_v15 }
 0x1e9   :  { %3816 = vmatpush2.bf16.msra.mxu1 %v4876_v27  ;;  %v5629_v27 = vpop.f32.mrf.mxu1 }
 0x1ea   :  { %3817 = vmatprep.subr.bf16.mxu1 %v4869_v29  ;;  %v4941_v29 = vcombine.high %v371_v63, %v375_v20 }
 0x1eb   :  { %3775 = vmatpush2.bf16.msra.mxu0 %v4740_v34  ;;  %v495_v34 = vld [vmem:[#allocation2 + $0xcf8] sm:$0xff] }
 0x1ec   :  { %3776 = vmatprep.subr.bf16.mxu0 %v4733_v36  ;;  %v5633_v36 = vpop.f32.mrf.mxu1 }
 0x1ed   :  { %3818 = vmatpush2.bf16.msra.mxu1 %v4868_v35  ;;  %v4940_v35 = vcombine.low %v371_v63, %v375_v20 }
 0x1ee   :  { %3819 = vmatprep.subr.bf16.mxu1 %v4861_v37 }
 0x1ef   :  { %3777 = vmatpush2.bf16.msra.mxu0 %v4732_v42  ;;  %v483_v42 = vld [vmem:[#allocation2 + $0xc98] sm:$0xff] }
 0x1f0   :  { %3778 = vmatprep.subr.bf16.mxu0 %v4725_v44  ;;  %v4932_v44 = vcombine.low %v363_v59, %v367_v31 }
 0x1f1   :  { %3820 = vmatpush2.bf16.msra.mxu1 %v4860_v43  ;;  %v487_v43 = vld [vmem:[#allocation2 + $0xcb8] sm:$0xff] }
 0x1f2   :  { %3821 = vmatprep.subr.bf16.mxu1 %v4853_v45  ;;  %v5637_v45 = vpop.f32.mrf.mxu1  ;;  %v5053_v51 = vcombine.high %v483_v42, %v487_v43  ;;  %v5052_v55 = vcombine.low %v483_v42, %v487_v43  ;;  %v575_v42 = vld [vmem:[#allocation2 + $0xf78] sm:$0xff] }
 0x1f3   :  { %3779 = vmatpush2.bf16.msra.mxu0 %v4724_v52  ;;  %v347_v52 = vld [vmem:[#allocation2 + $0x858] sm:$0xff] }
 0x1f4   :  { %3780 = vmatprep.subr.bf16.mxu0 %v4717_v56  ;;  %v5641_v56 = vpop.f32.mrf.mxu1 }
 0x1f5   :  { %3822 = vmatpush2.bf16.msra.mxu1 %v4852_v53  ;;  %v351_v53 = vld [vmem:[#allocation2 + $0x878] sm:$0xff] }
 0x1f6   :  { %3823 = vmatprep.subr.bf16.mxu1 %v4845_v57  ;;  %v475_v57 = vld [vmem:[#allocation2 + $0xc58] sm:$0xff]  ;;  %v5645_v2 = vpop.f32.mrf.mxu1  ;;  %v4916_v6 = vcombine.low %v347_v52, %v351_v53 }
 0x1f7   :  { %3781 = vmatpush2.bf16.msra.mxu0 %v4716_v61  ;;  %v4917_v61 = vcombine.high %v347_v52, %v351_v53  ;;  %v435_v52 = vld [vmem:[#allocation2 + $0xb18] sm:$0xff] }
 0x1f8   :  { %3836 = vmatprep.subr.bf16.mxu0 %v4965_v0  ;;  %v339_v0 = vld [vmem:[#allocation2 + $0x818] sm:$0xff]  ;;  %v5649_v14 = vpop.f32.mrf.mxu1 }
 0x1f9   :  { %3824 = vmatpush2.bf16.msra.mxu1 %v4844_v62  ;;  %v5045_v62 = vcombine.high %v475_v57, %v479_v23  ;;  %v439_v53 = vld [vmem:[#allocation2 + $0xb38] sm:$0xff] }
 0x1fa   :  { %3879 = vmatprep.subr.bf16.mxu1 %v5093_v1  ;;  %3783 = vmatmul.mubr.bf16.vlgmr.msra.gmra.mxu0 %v5551_v21  ;;  %v499_v21 = vld [vmem:[#allocation2 + $0xd18] sm:$0xff] }
 0x1fb   :  { %3837 = vmatpush1.bf16.msra.mxu0 %v4964_v7  ;;  %3868 = vmatprep.mubr.bf16.mxu0 %v5579_v60  ;;  %v5069_v30 = vcombine.high %v499_v21, %v503_v26  ;;  %v491_v60 = vld [vmem:[#allocation2 + $0xcd8] sm:$0xff]  ;;  %v5068_v37 = vcombine.low %v499_v21, %v503_v26 }
 0x1fc   :  { %3826 = vmatmul.mubr.bf16.vlgmr.msra.gmra.mxu1 %v5565_v25  ;;  %3838 = vmatprep.subr.bf16.mxu0 %v4957_v9  ;;  %v4948_v25 = vcombine.low %v379_v11, %v383_v12  ;;  %v5061_v39 = vcombine.high %v491_v60, %v495_v34  ;;  %v5060_v49 = vcombine.low %v491_v60, %v495_v34  ;;  %v343_v1 = vld [vmem:[#allocation2 + $0x838] sm:$0xff] }
 0x1fd   :  { %3880 = vmatpush1.bf16.msra.mxu1 %v5092_v8  ;;  %3911 = vmatprep.mubr.bf16.mxu1 %v5584_v33  ;;  %v5635_v33 = vpop.f32.mrf.mxu0  ;;  %v5044_v8 = vcombine.low %v475_v57, %v479_v23  ;;  %v4909_v9 = vcombine.high %v339_v0, %v343_v1  ;;  %v459_v11 = vld [vmem:[#allocation2 + $0xbd8] sm:$0xff] }
 0x1fe   :  { %3881 = vmatprep.subr.bf16.mxu1 %v5085_v10  ;;  %v5037_v10 = vcombine.high %v467_v3, %v471_v5  ;;  %v463_v12 = vld [vmem:[#allocation2 + $0xbf8] sm:$0xff] }
 0x1ff   :  { %3839 = vmatpush1.bf16.msra.mxu0 %v4956_v16  ;;  %v5639_v48 = vpop.f32.mrf.mxu0  ;;  %v587_v16 = vld [vmem:[#allocation2 + $0xfd8] sm:$0xff]  ;;  %v5029_v63 = vcombine.high %v459_v11, %v463_v12  ;;  %v5028_v59 = vcombine.low %v459_v11, %v463_v12  ;;  %v5670_v12 = vld [vmem:[#allocation4] sm:$0xff] }
 0x200   :  { %3840 = vmatprep.subr.bf16.mxu0 %v4949_v58  ;;  %v4908_v58 = vcombine.low %v339_v0, %v343_v1  ;;  %v451_v21 = vld [vmem:[#allocation2 + $0xb98] sm:$0xff]  ;;  %v5140_v1 = vcombine.low %v571_v41, %v575_v42 }
 0x201   :  { %3882 = vmatpush1.bf16.msra.mxu1 %v5084_v18  ;;  %v5643_v54 = vpop.f32.mrf.mxu0  ;;  %v591_v18 = vld [vmem:[#allocation2 + $0xff8] sm:$0xff] }
 0x202   :  { %3883 = vmatprep.subr.bf16.mxu1 %v5077_v19  ;;  %v5036_v19 = vcombine.low %v467_v3, %v471_v5  ;;  %v5157_v20 = vcombine.high %v587_v16, %v591_v18  ;;  %v455_v26 = vld [vmem:[#allocation2 + $0xbb8] sm:$0xff]  ;;  %v5156_v60 = vcombine.low %v587_v16, %v591_v18  ;;  %v5005_v3 = vcombine.high %v435_v52, %v439_v53 }
 0x203   :  { %3841 = vmatpush1.bf16.msra.mxu0 %v4948_v25  ;;  %v5647_v7 = vpop.f32.mrf.mxu0  ;;  %v5653_v25 = vpop.f32.mrf.mxu1  ;;  %v5021_v34 = vcombine.high %v451_v21, %v455_v26  ;;  %v5020_v43 = vcombine.low %v451_v21, %v455_v26  ;;  %v559_v11 = vld [vmem:[#allocation2 + $0xef8] sm:$0xff]  ;;  %v5004_v18 = vcombine.low %v435_v52, %v439_v53 }
 0x204   :  { %3842 = vmatprep.subr.bf16.mxu0 %v4941_v29  ;;  %v579_v29 = vld [vmem:[#allocation2 + $0xf98] sm:$0xff] }
 0x205   :  { %3884 = vmatpush1.bf16.msra.mxu1 %v5076_v28  ;;  %v5651_v15 = vpop.f32.mrf.mxu0  ;;  %v5657_v31 = vpop.f32.mrf.mxu1  ;;  %v419_v26 = vld [vmem:[#allocation2 + $0xa98] sm:$0xff] }
 0x206   :  { %3885 = vmatprep.subr.bf16.mxu1 %v5069_v30  ;;  %v583_v30 = vld [vmem:[#allocation2 + $0xfb8] sm:$0xff] }
 0x207   :  { %3843 = vmatpush1.bf16.msra.mxu0 %v4940_v35  ;;  %v5655_v28 = vpop.f32.mrf.mxu0  ;;  %v5149_v35 = vcombine.high %v579_v29, %v583_v30 }
 0x208   :  { %3844 = vmatprep.subr.bf16.mxu0 %v4933_v38  ;;  %v447_v38 = vld [vmem:[#allocation2 + $0xb78] sm:$0xff] }
 0x209   :  { %3886 = vmatpush1.bf16.msra.mxu1 %v5068_v37  ;;  %v443_v37 = vld [vmem:[#allocation2 + $0xb58] sm:$0xff]  ;;  %v5659_v40 = vpop.f32.mrf.mxu0 }
 0x20a   :  { %3887 = vmatprep.subr.bf16.mxu1 %v5061_v39  ;;  %v594_v39 = vlaneseq }
 0x20b   :  { %3845 = vmatpush1.bf16.msra.mxu0 %v4932_v44  ;;  %v5661_v44 = vpop.f32.mrf.mxu1  ;;  %v3446_v23 = vpop.f32.mrf.mxu0 }
 0x20c   :  { %3846 = vmatprep.subr.bf16.mxu0 %v4925_v50  ;;  %v5013_v50 = vcombine.high %v443_v37, %v447_v38  ;;  %v5663_v57 = vshrl.u32 %v594_v39, 7 }
 0x20d   :  { %3888 = vmatpush1.bf16.msra.mxu1 %v5060_v49  ;;  %v5148_v49 = vcombine.low %v579_v29, %v583_v30  ;;  %v5667_v0 = vpop.f32.mrf.mxu0  ;;  %v423_v29 = vld [vmem:[#allocation2 + $0xab8] sm:$0xff] }
 0x20e   :  { %3889 = vmatprep.subr.bf16.mxu1 %v5053_v51  ;;  %v5141_v51 = vcombine.high %v571_v41, %v575_v42  ;;  %v608_v16 = vsub.s32 3, %v5663_v57  ;;  %v4989_v42 = vcombine.high %v419_v26, %v423_v29 }
 0x20f   :  { %3847 = vmatpush1.bf16.msra.mxu0 %v4924_v24  ;;  %v563_v24 = vld [vmem:[#allocation2 + $0xf18] sm:$0xff] }
 0x210   :  { %3848 = vmatprep.subr.bf16.mxu0 %v4917_v61  ;;  %v5012_v61 = vcombine.low %v443_v37, %v447_v38 }
 0x211   :  { %3890 = vmatpush1.bf16.msra.mxu1 %v5052_v55  ;;  %v567_v55 = vld [vmem:[#allocation2 + $0xf38] sm:$0xff] }
 0x212   :  { %3891 = vmatprep.subr.bf16.mxu1 %v5045_v62  ;;  %v5665_v62 = vpop.f32.mrf.mxu1  ;;  %v5133_v5 = vcombine.high %v563_v24, %v567_v55 }
 0x213   :  { %3849 = vmatpush1.bf16.msra.mxu0 %v4916_v6  ;;  %v427_v6 = vld [vmem:[#allocation2 + $0xad8] sm:$0xff] }
 0x214   :  { %3850 = vmatprep.subr.bf16.mxu0 %v4909_v9  ;;  %v600_v9 = vsub.s32 1, %v5663_v57 }
 0x215   :  { %3892 = vmatpush1.bf16.msra.mxu1 %v5044_v8  ;;  %v431_v8 = vld [vmem:[#allocation2 + $0xaf8] sm:$0xff] }
 0x216   :  { %3893 = vmatprep.subr.bf16.mxu1 %v5037_v10  ;;  %v555_v10 = vld [vmem:[#allocation2 + $0xed8] sm:$0xff]  ;;  %v601_v30 = vrot.slane %v5670_v12, %v600_v9  ;;  %v4996_v37 = vcombine.low %v427_v6, %v431_v8 }
 0x217   :  { %3851 = vmatpush1.bf16.msra.mxu0 %v4908_v58  ;;  %v3489_v58 = vpop.f32.mrf.mxu1  ;;  %v5125_v21 = vcombine.high %v555_v10, %v559_v11  ;;  %v5124_v41 = vcombine.low %v555_v10, %v559_v11  ;;  %v403_v9 = vld [vmem:[#allocation2 + $0xa18] sm:$0xff] }
 0x218   :  { %3852 = vmatprep.subr.bf16.mxu0 %v5029_v63  ;;  %v5132_v63 = vcombine.low %v563_v24, %v567_v55  ;;  %v3275_v38 = vadd.f32 %v5631_v32, %v601_v30  ;;  %v3271_v52 = vadd.f32 %v5619_v13, %v601_v30  ;;  %v539_v24 = vld [vmem:[#allocation2 + $0xe58] sm:$0xff]  ;;  %v4988_v32 = vcombine.low %v419_v26, %v423_v29 }
 0x219   :  { %3894 = vmatpush1.bf16.msra.mxu1 %v5036_v19  ;;  %v3528_v19 = vpop.f32.mrf.mxu0  ;;  %v543_v55 = vld [vmem:[#allocation2 + $0xe78] sm:$0xff] }
 0x21a   :  { %3895 = vmatprep.subr.bf16.mxu1 %v5157_v20  ;;  %v4997_v20 = vcombine.high %v427_v6, %v431_v8  ;;  %v5109_v8 = vcombine.high %v539_v24, %v543_v55  ;;  %v407_v10 = vld [vmem:[#allocation2 + $0xa38] sm:$0xff]  ;;  %v3314_v13 = vadd.f32 %v5629_v27, %v3271_v52 }
 0x21b   :  { %3853 = vmatpush2.bf16.msra.mxu0 %v5028_v59  ;;  %v5674_v59 = vpop.f32.mrf.mxu1  ;;  %v5678_v39 = vpop.f32.mrf.mxu0  ;;  %v4973_v26 = vcombine.high %v403_v9, %v407_v10 }
 0x21c   :  { %3854 = vmatprep.subr.bf16.mxu0 %v5021_v34  ;;  %v551_v34 = vld [vmem:[#allocation2 + $0xeb8] sm:$0xff] }
 0x21d   :  { %3896 = vmatpush2.bf16.msra.mxu1 %v5156_v60  ;;  %v547_v60 = vld [vmem:[#allocation2 + $0xe98] sm:$0xff]  ;;  %v3571_v53 = vpop.f32.mrf.mxu1 }
 0x21e   :  { %3897 = vmatprep.subr.bf16.mxu1 %v5149_v35  ;;  %v609_v35 = vrot.slane %v5670_v12, %v608_v16 }
 0x21f   :  { %3855 = vmatpush2.bf16.msra.mxu0 %v5020_v43  ;;  %v5685_v16 = vpop.f32.mrf.mxu1 }
 0x220   :  { %3856 = vmatprep.subr.bf16.mxu0 %v5013_v50  ;;  %v3447_v43 = vadd.f32 %v3446_v23, %v609_v35  ;;  %v411_v50 = vld [vmem:[#allocation2 + $0xa58] sm:$0xff] }
 0x221   :  { %3898 = vmatpush2.bf16.msra.mxu1 %v5148_v49  ;;  %v5117_v49 = vcombine.high %v547_v60, %v551_v34  ;;  %v3575_v30 = vpop.f32.mrf.mxu1 }
 0x222   :  { %3899 = vmatprep.subr.bf16.mxu1 %v5141_v51  ;;  %v415_v51 = vld [vmem:[#allocation2 + $0xa78] sm:$0xff]  ;;  %v3490_v6 = vadd.f32 %v3489_v58, %v3447_v43  ;;  %v5108_v58 = vcombine.low %v539_v24, %v543_v55  ;;  %v5327_v55 = vld [vmem:[#allocation6 + $0x68] sm:$0xff]  }
 0x223   :  { %3857 = vmatpush2.bf16.msra.mxu0 %v5012_v61  ;;  %v3443_v61 = vadd.f32 %v5655_v28, %v609_v35  ;;  %v4981_v23 = vcombine.high %v411_v50, %v415_v51  ;;  %v531_v28 = vld [vmem:[#allocation2 + $0xe18] sm:$0xff] }
 0x224   :  { %3858 = vmatprep.subr.bf16.mxu0 %v5005_v3  ;;  %v3532_v3 = vpop.f32.mrf.mxu0  ;;  %v5326_v24 = vld [vmem:[#allocation6 + $0xb0] sm:$0xff]  }
 0x225   :  { %3900 = vmatpush2.bf16.msra.mxu1 %v5140_v1  ;;  %v3318_v1 = vadd.f32 %v5637_v45, %v3275_v38  ;;  %v3486_v45 = vadd.f32 %v5661_v44, %v3443_v61  ;;  %v5320_v38 = vld [vmem:[#allocation6 + $0xf8] sm:$0xff]   ;;  %v5328_v61 = vld [vmem:[#allocation6 + $0xe8] sm:$0xff]  }
 0x226   :  { %3901 = vmatprep.subr.bf16.mxu1 %v5133_v5  ;;  %v5116_v5 = vcombine.low %v547_v60, %v551_v34  ;;  %v4972_v34 = vcombine.low %v403_v9, %v407_v10  ;;  %v5335_v9 = vld [vmem:[#allocation6 + $0x58] sm:$0xff]  }
 0x227   :  { %3859 = vmatpush2.bf16.msra.mxu0 %v5004_v18  ;;  %v3361_v11 = vadd.f32 %v5647_v7, %v3318_v1  ;;  %v535_v18 = vld [vmem:[#allocation2 + $0xe38] sm:$0xff]  ;;  %v3529_v29 = vadd.f32 %v3528_v19, %v3486_v45  ;;  %v5321_v19 = vld [vmem:[#allocation6 + $0x38] sm:$0xff]   ;;  %v596_v1 = vsub.s32 0, %v5663_v57 }
 0x228   :  { %3860 = vmatprep.subr.bf16.mxu0 %v4997_v20  ;;  %v4980_v20 = vcombine.low %v411_v50, %v415_v51  ;;  %v5101_v27 = vcombine.high %v531_v28, %v535_v18  ;;  %v5100_v35 = vcombine.low %v531_v28, %v535_v18  ;;  %v5323_v50 = vld [vmem:[#allocation6 + $0x70] sm:$0xff]   ;;  %v5337_v18 = vld [vmem:[#allocation6 + $0x18] sm:$0xff]  }
 0x229   :  { %3902 = vmatpush2.bf16.msra.mxu1 %v5132_v63  ;;  %v3533_v63 = vadd.f32 %v3532_v3, %v3490_v6  ;;  %v3404_v7 = vadd.f32 %v5653_v25, %v3361_v11  ;;  %v5322_v25 = vld [vmem:[#allocation6 + $0xb8] sm:$0xff]   ;;  %v5331_v3 = vld [vmem:[#allocation6 + $0x60] sm:$0xff]   ;;  %v597_v6 = vrot.slane %v5670_v12, %v596_v1 }
 0x22a   :  { %3903 = vmatprep.subr.bf16.mxu1 %v5125_v21  ;;  %v3357_v21 = vadd.f32 %v5639_v48, %v3314_v13  ;;  %v3572_v48 = vadd.f32 %v3571_v53, %v3529_v29  ;;  %v5325_v53 = vld [vmem:[#allocation6 + $0x30] sm:$0xff]   ;;  %v5336_v13 = vld [vmem:[#allocation6 + $0xd8] sm:$0xff]  }
 0x22b   :  { %3861 = vmatpush2.bf16.msra.mxu0 %v4996_v37  ;;  %v3576_v60 = vadd.f32 %v3575_v30, %v3533_v63  ;;  %v5319_v37 = vld [vmem:[#allocation6 + $0x78] sm:$0xff]   ;;  %v3273_v11 = vadd.f32 %v5626_v22, %v597_v6  ;;  %v3269_v45 = vadd.f32 %v5617_v4, %v597_v6  ;;  %v5341_v22 = vld [vmem:[#allocation6 + $0x10] sm:$0xff]   ;;  %v5363_v6 = vld [vmem:[#allocation6 + $0x148] sm:$0xff]  }
 0x22c   :  { %3862 = vmatprep.subr.bf16.mxu0 %v4989_v42  ;;  %v3400_v44 = vadd.f32 %v5645_v2, %v3357_v21  ;;  %v5324_v2 = vld [vmem:[#allocation6 + $0xf0] sm:$0xff]   ;;  %v5338_v63 = vld [vmem:[#allocation6 + $0x98] sm:$0xff]  }
 0x22d   :  { %3904 = vmatpush2.bf16.msra.mxu1 %v5124_v41  ;;  %v3931_v41 = vmax.f32 %v3404_v7, 0.0  ;;  %v3933_v42 = vmax.f32 %v3576_v60, 0.0  ;;  %v5342_v4 = vld [vmem:[#allocation6 + $0x90] sm:$0xff]   ;;  %v5343_v7 = vld [vmem:[#allocation6 + $0x48] sm:$0xff]   ;;  %v5359_v1 = vld [vmem:[#allocation6 + $0x158] sm:$0xff]  }
 0x22e   :  { %3905 = vmatprep.subr.bf16.mxu1 %v5117_v49  ;;  %v3923_v43 = vmax.f32 %v3400_v44, 0.0  ;;  %v3925_v49 = vmax.f32 %v3572_v48, 0.0  ;;  %v5344_v60 = vld [vmem:[#allocation6 + $0xc8] sm:$0xff]   ;;  %v5347_v44 = vld [vmem:[#allocation6 + $0x40] sm:$0xff]  }
 0x22f   :  { %3863 = vmatpush2.bf16.msra.mxu0 %v4988_v32  ;;  %v5329_v32 = vld [vmem:[#allocation6 + $0x28] sm:$0xff]  }
 0x230   :  { %3864 = vmatprep.subr.bf16.mxu0 %v4981_v23  ;;  %v3939_v51 = vpack.c.bf16 %v3931_v41, %v3923_v43  ;;  %v3941_v52 = vpack.c.bf16 %v3933_v42, %v3925_v49  ;;  %v5333_v23 = vld [vmem:[#allocation6 + $0x20] sm:$0xff]   ;;  %v5367_v41 = vld [vmem:[#allocation6 + $0x1f8] sm:$0xff]   ;;  %v5369_v49 = vld [vmem:[#allocation6 + $0x1f0] sm:$0xff]  }
 0x231   :  { %3906 = vmatpush2.bf16.msra.mxu1 %v5116_v5  ;;  %v5332_v5 = vld [vmem:[#allocation6 + $0xe0] sm:$0xff]  }
 0x232   :  { %3907 = vmatprep.subr.bf16.mxu1 %v5109_v8  ;;  %v5334_v8 = vld [vmem:[#allocation6 + $0xa0] sm:$0xff]  }
 0x233   :  { %3865 = vmatpush2.bf16.msra.mxu0 %v4980_v20  ;;  %v5339_v20 = vld [vmem:[#allocation6 + $0x50] sm:$0xff]  }
 0x234   :  { %3866 = vmatprep.subr.bf16.mxu0 %v4973_v26  ;;  %v3316_v26 = vadd.f32 %v5633_v36, %v3273_v11 }
 0x235   :  { %3908 = vmatpush2.bf16.msra.mxu1 %v5108_v58  ;;  %v5340_v58 = vld [vmem:[#allocation6 + $0xd0] sm:$0xff]  }
 0x236   :  { %3909 = vmatprep.subr.bf16.mxu1 %v5101_v27  ;;  %v3359_v27 = vadd.f32 %v5643_v54, %v3316_v26  ;;  %v5346_v54 = vld [vmem:[#allocation6 + $0x88] sm:$0xff]  }
 0x237   :  { %3867 = vmatpush2.bf16.msra.mxu0 %v4972_v34  ;;  %v5345_v34 = vld [vmem:[#allocation6 + $0x8] sm:$0xff]  }
 0x238   :  { %5223 = vmatprep.subr.bf16.mxu0 %v5319_v37 }
 0x239   :  { %3910 = vmatpush2.bf16.msra.mxu1 %v5100_v35 }
 0x23a   :  { %5245 = vmatprep.subr.bf16.mxu1 %v5320_v38  ;;  %3869 = vmatmul.mubr.bf16.vlgmr.msra.gmra.mxu0 %v5591_v46  ;;  %v5330_v46 = vld [vmem:[#allocation6 + $0xa8] sm:$0xff]   ;;  %v5351_v38 = vld [vmem:[#allocation6 + $0x178] sm:$0xff]  }
 0x23b   :  { %5224 = vmatpush3.bf16.msra.mxu0 %v5321_v19  ;;  %4497 = vmatprep.mubr.bf16.mxu0 %v3939_v51  ;;  %v5355_v51 = vld [vmem:[#allocation6 + $0x168] sm:$0xff]  }
 0x23c   :  { %3912 = vmatmul.mubr.bf16.vlgmr.msra.gmra.mxu1 %v5595_v47  ;;  %5225 = vmatprep.subr.bf16.mxu0 %v5323_v50  ;;  %v604_v47 = vsub.s32 2, %v5663_v57  ;;  %v5354_v50 = vld [vmem:[#allocation6 + $0x130] sm:$0xff]  }
 0x23d   :  { %5246 = vmatpush3.bf16.msra.mxu1 %v5322_v25  ;;  %4538 = vmatprep.mubr.bf16.mxu1 %v3941_v52  ;;  %v5368_v25 = vld [vmem:[#allocation6 + $0x1b8] sm:$0xff]   ;;  %v5371_v52 = vld [vmem:[#allocation6 + $0x1e8] sm:$0xff]  }
 0x23e   :  { %5247 = vmatprep.subr.bf16.mxu1 %v5324_v2  ;;  %v605_v10 = vrot.slane %v5670_v12, %v604_v47  ;;  %v5370_v2 = vld [vmem:[#allocation6 + $0x1b0] sm:$0xff]  }
 0x23f   :  { %5226 = vmatpush3.bf16.msra.mxu0 %v5325_v53  ;;  %v5356_v53 = vld [vmem:[#allocation6 + $0x128] sm:$0xff]   ;;  %v5361_v47 = vld [vmem:[#allocation6 + $0x150] sm:$0xff]  }
 0x240   :  { %5227 = vmatprep.subr.bf16.mxu0 %v5327_v55  ;;  %v3445_v28 = vadd.f32 %v5659_v40, %v605_v10  ;;  %v3441_v21 = vadd.f32 %v5651_v15, %v605_v10  ;;  %v3312_v40 = vadd.f32 %v5623_v17, %v3269_v45  ;;  %v3402_v17 = vadd.f32 %v5649_v14, %v3359_v27  ;;  %v5372_v55 = vld [vmem:[#allocation6 + $0x1a8] sm:$0xff]  }
 0x241   :  { %5248 = vmatpush3.bf16.msra.mxu1 %v5326_v24  ;;  %v5357_v24 = vld [vmem:[#allocation6 + $0x160] sm:$0xff]   ;;  %v5364_v10 = vld [vmem:[#allocation6 + $0x108] sm:$0xff]  }
 0x242   :  { %5249 = vmatprep.subr.bf16.mxu1 %v5328_v61  ;;  %v3488_v29 = vadd.f32 %v5665_v62, %v3445_v28  ;;  %v3484_v30 = vadd.f32 %v5657_v31, %v3441_v21  ;;  %v3355_v36 = vadd.f32 %v5635_v33, %v3312_v40  ;;  %v5348_v31 = vld [vmem:[#allocation6 + $0xc0] sm:$0xff]   ;;  %v3930_v48 = vmax.f32 %v3402_v17, 0.0 }
 0x243   :  { %5228 = vmatpush3.bf16.msra.mxu0 %v5329_v32  ;;  %v5349_v33 = vld [vmem:[#allocation6] sm:$0xff]  }
 0x244   :  { %5229 = vmatprep.subr.bf16.mxu0 %v5331_v3  ;;  %v3531_v15 = vadd.f32 %v5678_v39, %v3488_v29  ;;  %v3527_v62 = vadd.f32 %v5667_v0, %v3484_v30  ;;  %v3398_v39 = vadd.f32 %v5641_v56, %v3355_v36  ;;  %v5350_v0 = vld [vmem:[#allocation6 + $0x80] sm:$0xff]   ;;  %v5353_v56 = vld [vmem:[#allocation6 + $0x170] sm:$0xff]   ;;  %v5360_v3 = vld [vmem:[#allocation6 + $0x118] sm:$0xff]  }
 0x245   :  { %5250 = vmatpush3.bf16.msra.mxu1 %v5330_v46  ;;  %v5373_v61 = vld [vmem:[#allocation6 + $0x1e0] sm:$0xff]   ;;  %v5376_v36 = vld [vmem:[#allocation6 + $0x198] sm:$0xff]  }
 0x246   :  { %5251 = vmatprep.subr.bf16.mxu1 %v5332_v5  ;;  %v3574_v35 = vadd.f32 %v5685_v16, %v3531_v15  ;;  %v3570_v37 = vadd.f32 %v5674_v59, %v3527_v62  ;;  %v3922_v42 = vmax.f32 %v3398_v39, 0.0  ;;  %v5352_v16 = vld [vmem:[#allocation6 + $0x138] sm:$0xff]   ;;  %v5358_v32 = vld [vmem:[#allocation6 + $0x120] sm:$0xff]   ;;  %v5362_v5 = vld [vmem:[#allocation6 + $0x110] sm:$0xff]  }
 0x247   :  { %5230 = vmatpush3.bf16.msra.mxu0 %v5333_v23  ;;  %v5374_v46 = vld [vmem:[#allocation6 + $0x1a0] sm:$0xff]   ;;  %v3612_v23 = vpop.f32.mrf.mxu0  ;;  %v5377_v39 = vld [vmem:[#allocation6 + $0x1d0] sm:$0xff]  }
 0x248   :  { %5231 = vmatprep.subr.bf16.mxu0 %v5335_v9  ;;  %v3932_v14 = vmax.f32 %v3574_v35, 0.0  ;;  %v3924_v19 = vmax.f32 %v3570_v37, 0.0  ;;  %v3938_v43 = vpack.c.bf16 %v3930_v48, %v3922_v42  ;;  %v616_v9 = vsub.s32 5, %v5663_v57  ;;  %v5365_v28 = vld [vmem:[#allocation6 + $0x140] sm:$0xff]  }
 0x249   :  { %5252 = vmatpush3.bf16.msra.mxu1 %v5334_v8  ;;  %v3655_v8 = vpop.f32.mrf.mxu1  ;;  %v3614_v11 = vpop.f32.mrf.mxu0 }
 0x24a   :  { %5253 = vmatprep.subr.bf16.mxu1 %v5336_v13  ;;  %v3940_v59 = vpack.c.bf16 %v3932_v14, %v3924_v19  ;;  %v612_v13 = vsub.s32 4, %v5663_v57  ;;  %v617_v45 = vrot.slane %v5670_v12, %v616_v9 }
 0x24b   :  { %5232 = vmatpush3.bf16.msra.mxu0 %v5337_v18  ;;  %v3657_v18 = vpop.f32.mrf.mxu1  ;;  %v3616_v21 = vpop.f32.mrf.mxu0 }
 0x24c   :  { %5233 = vmatprep.subr.bf16.mxu0 %v5339_v20  ;;  %v613_v20 = vrot.slane %v5670_v12, %v612_v13  ;;  %v3615_v26 = vadd.f32 %v3614_v11, %v617_v45 }
 0x24d   :  { %5254 = vmatpush3.bf16.msra.mxu1 %v5338_v63  ;;  %v5366_v63 = vld [vmem:[#allocation6 + $0x100] sm:$0xff]  }
 0x24e   :  { %5255 = vmatprep.subr.bf16.mxu1 %v5340_v58  ;;  %v3659_v58 = vpop.f32.mrf.mxu1  ;;  %v3613_v29 = vadd.f32 %v3612_v23, %v613_v20  ;;  %v3617_v40 = vadd.f32 %v3616_v21, %v613_v20  ;;  %v3658_v30 = vadd.f32 %v3657_v18, %v3615_v26 }
 0x24f   :  { %5234 = vmatpush3.bf16.msra.mxu0 %v5341_v22  ;;  %v3618_v22 = vpop.f32.mrf.mxu0 }
 0x250   :  { %5235 = vmatprep.subr.bf16.mxu0 %v5343_v7  ;;  %v3661_v27 = vpop.f32.mrf.mxu1  ;;  %v5375_v7 = vld [vmem:[#allocation6 + $0x1d8] sm:$0xff]   ;;  %v3619_v15 = vadd.f32 %v3618_v22, %v617_v45  ;;  %v3656_v62 = vadd.f32 %v3655_v8, %v3613_v29  ;;  %v3660_v17 = vadd.f32 %v3659_v58, %v3617_v40 }
 0x251   :  { %5256 = vmatpush3.bf16.msra.mxu1 %v5342_v4 }
 0x252   :  { %5257 = vmatprep.subr.bf16.mxu1 %v5344_v60  ;;  %v3662_v37 = vadd.f32 %v3661_v27, %v3619_v15 }
 0x253   :  { %5236 = vmatpush3.bf16.msra.mxu0 %v5345_v34 }
 0x254   :  { %5237 = vmatprep.subr.bf16.mxu0 %v5347_v44 }
 0x255   :  { %5258 = vmatpush3.bf16.msra.mxu1 %v5346_v54 }
 0x256   :  { %5259 = vmatprep.subr.bf16.mxu1 %v5348_v31 }
 0x257   :  { %5238 = vmatpush3.bf16.msra.mxu0 %v5349_v33 }
 0x258   :  { %5267 = vmatprep.subr.bf16.mxu0 %v5351_v38 }
 0x259   :  { %5260 = vmatpush3.bf16.msra.mxu1 %v5350_v0  ;;  %v5378_v0 = vld [vmem:[#allocation6 + $0x190] sm:$0xff]  }
 0x25a   :  { %5289 = vmatprep.subr.bf16.mxu1 %v5367_v41  ;;  %4498 = vmatmul.mubr.bf16.vlgmr.msra.gmra.mxu0 %v3938_v43  ;;  %v5379_v43 = vld [vmem:[#allocation6 + $0x1c8] sm:$0xff]  }
 0x25b   :  { %5268 = vmatpush3.bf16.msra.mxu0 %v5352_v16 }
 0x25c   :  { %4539 = vmatmul.mubr.bf16.vlgmr.msra.gmra.mxu1 %v3940_v59  ;;  %5269 = vmatprep.subr.bf16.mxu0 %v5353_v56 }
 0x25d   :  { %5290 = vmatpush3.bf16.msra.mxu1 %v5368_v25  ;;  %v5380_v25 = vld [vmem:[#allocation6 + $0x188] sm:$0xff]  }
 0x25e   :  { %5291 = vmatprep.subr.bf16.mxu1 %v5369_v49 }
 0x25f   :  { %5270 = vmatpush3.bf16.msra.mxu0 %v5354_v50 }
 0x260   :  { %5271 = vmatprep.subr.bf16.mxu0 %v5355_v51 }
 0x261   :  { %5292 = vmatpush3.bf16.msra.mxu1 %v5370_v2  ;;  %v5381_v2 = vld [vmem:[#allocation6 + $0x1c0] sm:$0xff]  }
 0x262   :  { %5293 = vmatprep.subr.bf16.mxu1 %v5371_v52 }
 0x263   :  { %5272 = vmatpush3.bf16.msra.mxu0 %v5356_v53  ;;  %v5382_v53 = vld [vmem:[#allocation6 + $0x180] sm:$0xff]  }
 0x264   :  { %5273 = vmatprep.subr.bf16.mxu0 %v5357_v24 }
 0x265   :  { %5294 = vmatpush3.bf16.msra.mxu1 %v5372_v55 }
 0x266   :  { %5295 = vmatprep.subr.bf16.mxu1 %v5373_v61 }
 0x267   :  { %5274 = vmatpush3.bf16.msra.mxu0 %v5358_v32  ;;  %v624_v32 = vsub.s32 7, %v5663_v57 }
 0x268   :  { %5275 = vmatprep.subr.bf16.mxu0 %v5359_v1  ;;  %v620_v1 = vsub.s32 6, %v5663_v57 }
 0x269   :  { %5296 = vmatpush3.bf16.msra.mxu1 %v5374_v46 }
 0x26a   :  { %5297 = vmatprep.subr.bf16.mxu1 %v5375_v7 }
 0x26b   :  { %5276 = vmatpush3.bf16.msra.mxu0 %v5360_v3 }
 0x26c   :  { %5277 = vmatprep.subr.bf16.mxu0 %v5361_v47  ;;  %v625_v47 = vrot.slane %v5670_v12, %v624_v32 }
 0x26d   :  { %5298 = vmatpush3.bf16.msra.mxu1 %v5376_v36 }
 0x26e   :  { %5299 = vmatprep.subr.bf16.mxu1 %v5377_v39 }
 0x26f   :  { %5278 = vmatpush3.bf16.msra.mxu0 %v5362_v5  ;;  %v621_v5 = vrot.slane %v5670_v12, %v620_v1 }
 0x270   :  { %5279 = vmatprep.subr.bf16.mxu0 %v5363_v6 }
 0x271   :  { %5300 = vmatpush3.bf16.msra.mxu1 %v5378_v0 }
 0x272   :  { %5301 = vmatprep.subr.bf16.mxu1 %v5379_v43 }
 0x273   :  { %5280 = vmatpush3.bf16.msra.mxu0 %v5364_v10 }
 0x274   :  { %5281 = vmatprep.subr.bf16.mxu0 %v5365_v28 }
 0x275   :  { %5302 = vmatpush3.bf16.msra.mxu1 %v5380_v25 }
 0x276   :  { %5303 = vmatprep.subr.bf16.mxu1 %v5381_v2 }
 0x277   :  { %5282 = vmatpush3.bf16.msra.mxu0 %v5366_v63 }
 0x279   :  { %5304 = vmatpush3.bf16.msra.mxu1 %v5382_v53 }
 0x27a   :  { %v3698_v4 = vpop.f32.mrf.mxu0 }
 0x27b   :  { %v3699_v35 = vadd.f32 %v3698_v4, %v3656_v62 }
 0x27c   :  { %v3741_v60 = vpop.f32.mrf.mxu1  ;;  %v3700_v34 = vpop.f32.mrf.mxu0 }
 0x27d   :  { %v3701_v54 = vadd.f32 %v3700_v34, %v3658_v30  ;;  %v3742_v19 = vadd.f32 %v3741_v60, %v3699_v35 }
 0x27e   :  { %v3743_v44 = vpop.f32.mrf.mxu1  ;;  %v3702_v31 = vpop.f32.mrf.mxu0 }
 0x27f   :  { %v3703_v33 = vadd.f32 %v3702_v31, %v3660_v17  ;;  %v3744_v14 = vadd.f32 %v3743_v44, %v3701_v54  ;;  %v3926_v51 = vmax.f32 %v3742_v19, 0.0  ;;  %v5158_v19 = vld [vmem:[#allocation7] ss:$0 sm:$0xff] }
 0x280   :  { %v3745_v48 = vpop.f32.mrf.mxu1  ;;  %v3704_v38 = vpop.f32.mrf.mxu0 }
 0x281   :  { %v3746_v41 = vadd.f32 %v3745_v48, %v3703_v33  ;;  %v3705_v42 = vadd.f32 %v3704_v38, %v3662_v37  ;;  %v3927_v49 = vmax.f32 %v3744_v14, 0.0 }
 0x282   :  { %v3747_v16 = vpop.f32.mrf.mxu1 }
 0x283   :  { %v3748_v56 = vadd.f32 %v3747_v16, %v3705_v42  ;;  %v3934_v59 = vmax.f32 %v3746_v41, 0.0 }
 0x285   :  { %v3935_v50 = vmax.f32 %v3748_v56, 0.0  ;;  %v3942_v24 = vpack.c.bf16 %v3934_v59, %v3926_v51 }
 0x287   :  { %v3943_v52 = vpack.c.bf16 %v3935_v50, %v3927_v49 }
 0x289   :  { %4579 = vmatprep.mubr.bf16.mxu0 %v3943_v52 }
 0x28a   :  { %4580 = vmatmul.mubr.bf16.vlgmr.msra.gmra.mxu0 %v3942_v24 }
 0x2ba   :  { %v3784_v55 = vpop.f32.mrf.mxu0 }
 0x2bb   :  { %v3785_v9 = vadd.f32 %v3784_v55, %v621_v5 }
 0x2bc   :  { %v3827_v61 = vpop.f32.mrf.mxu1  ;;  %v3786_v46 = vpop.f32.mrf.mxu0 }
 0x2bd   :  { %v3787_v8 = vadd.f32 %v3786_v46, %v625_v47  ;;  %v3828_v20 = vadd.f32 %v3827_v61, %v3785_v9 }
 0x2be   :  { %v3829_v3 = vpop.f32.mrf.mxu1  ;;  %v3788_v23 = vpop.f32.mrf.mxu0 }
 0x2bf   :  { %v3789_v13 = vadd.f32 %v3788_v23, %v621_v5  ;;  %v3830_v18 = vadd.f32 %v3829_v3, %v3787_v8 }
 0x2c0   :  { %v3831_v6 = vpop.f32.mrf.mxu1  ;;  %v3790_v10 = vpop.f32.mrf.mxu0 }
 0x2c1   :  { %v3791_v45 = vadd.f32 %v3790_v10, %v625_v47  ;;  %v3832_v57 = vadd.f32 %v3831_v6, %v3789_v13 }
 0x2c2   :  { %v3833_v11 = vpop.f32.mrf.mxu1 }
 0x2c3   :  { %v3834_v40 = vadd.f32 %v3833_v11, %v3791_v45 }
 0x2fa   :  { %v3870_v28 = vpop.f32.mrf.mxu0 }
 0x2fb   :  { %v3871_v29 = vadd.f32 %v3870_v28, %v3828_v20 }
 0x2fc   :  { %v3913_v63 = vpop.f32.mrf.mxu1  ;;  %v3872_v21 = vpop.f32.mrf.mxu0 }
 0x2fd   :  { %v3873_v58 = vadd.f32 %v3872_v21, %v3830_v18  ;;  %v3914_v60 = vadd.f32 %v3913_v63, %v3871_v29 }
 0x2fe   :  { %v3915_v26 = vpop.f32.mrf.mxu1  ;;  %v3874_v22 = vpop.f32.mrf.mxu0 }
 0x2ff   :  { %v3875_v12 = vadd.f32 %v3874_v22, %v3832_v57  ;;  %v3916_v7 = vadd.f32 %v3915_v26, %v3873_v58  ;;  %v3928_v44 = vmax.f32 %v3914_v60, 0.0 }
 0x300   :  { %v3917_v27 = vpop.f32.mrf.mxu1  ;;  %v3876_v4 = vpop.f32.mrf.mxu0 }
 0x301   :  { %v3918_v30 = vadd.f32 %v3917_v27, %v3875_v12  ;;  %v3877_v15 = vadd.f32 %v3876_v4, %v3834_v40  ;;  %v3929_v17 = vmax.f32 %v3916_v7, 0.0 }
 0x302   :  { %v3919_v36 = vpop.f32.mrf.mxu1 }
 0x303   :  { %v3920_v62 = vadd.f32 %v3919_v36, %v3877_v15  ;;  %v3936_v34 = vmax.f32 %v3918_v30, 0.0 }
 0x305   :  { %v3937_v54 = vmax.f32 %v3920_v62, 0.0  ;;  %v3944_v31 = vpack.c.bf16 %v3936_v34, %v3928_v44 }
 0x307   :  { %v3945_v35 = vpack.c.bf16 %v3937_v54, %v3929_v17 }
 0x309   :  { %4620 = vmatprep.mubr.bf16.mxu1 %v3945_v35 }
 0x30a   :  { %4621 = vmatmul.mubr.bf16.vlgmr.msra.gmra.mxu1 %v3944_v31 }
 0x31a   :  { %v5239_v39 = vpop.f32.mrf.mxu0 }
 0x31c   :  { %v5240_v37 = vpop.f32.mrf.mxu0  ;;  %v5261_v48 = vpop.f32.mrf.mxu1 }
 0x31d   :  { %v5241_v42 = vadd.f32 %v5240_v37, %v5239_v39 }
 0x31e   :  { %v5242_v33 = vpop.f32.mrf.mxu0  ;;  %v5262_v14 = vpop.f32.mrf.mxu1 }
 0x31f   :  { %v4500_v56 = vadd.f32 %v5241_v42, %v5158_v19  ;;  %v5263_v49 = vadd.f32 %v5262_v14, %v5261_v48 }
 0x320   :  { %v5243_v0 = vpop.f32.mrf.mxu0  ;;  %v5264_v16 = vpop.f32.mrf.mxu1 }
 0x321   :  { %v5244_v25 = vadd.f32 %v5243_v0, %v5242_v33  ;;  %v4541_v52 = vadd.f32 %v5263_v49, %v4500_v56 }
 0x322   :  { %v5265_v59 = vpop.f32.mrf.mxu1 }
 0x323   :  { %v4503_v53 = vadd.f32 %v5244_v25, %v5158_v19  ;;  %v5266_v55 = vadd.f32 %v5265_v59, %v5264_v16 }
 0x325   :  { %v4544_v3 = vadd.f32 %v5266_v55, %v4503_v53 }
 0x34a   :  { %v5283_v38 = vpop.f32.mrf.mxu0 }
 0x34c   :  { %v5284_v41 = vpop.f32.mrf.mxu0 }
 0x34d   :  { %v5285_v50 = vadd.f32 %v5284_v41, %v5283_v38 }
 0x34e   :  { %v5286_v43 = vpop.f32.mrf.mxu0 }
 0x34f   :  { %v4582_v61 = vadd.f32 %v5285_v50, %v4541_v52 }
 0x350   :  { %v5287_v51 = vpop.f32.mrf.mxu0 }
 0x351   :  { %v5288_v32 = vadd.f32 %v5287_v51, %v5286_v43 }
 0x353   :  { %v4585_v23 = vadd.f32 %v5288_v32, %v4544_v3 }
 0x3ca   :  { %v5305_v2 = vpop.f32.mrf.mxu1 }
 0x3cc   :  { %v5306_v24 = vpop.f32.mrf.mxu1 }
 0x3cd   :  { %v5307_v1 = vadd.f32 %v5306_v24, %v5305_v2 }
 0x3ce   :  { %v5308_v46 = vpop.f32.mrf.mxu1 }
 0x3cf   :  { %v4623_v47 = vadd.f32 %v5307_v1, %v4582_v61 }
 0x3d0   :  { %v5309_v5 = vpop.f32.mrf.mxu1 }
 0x3d1   :  { %4629 = vst [vmem:[%s5732_s5] sm:$0xff] %v4623_v47  ;;  %v5310_v6 = vadd.f32 %v5309_v5, %v5308_v46 }
 0x3d3   :  { %v4626_v8 = vadd.f32 %v5310_v6, %v4585_v23 }
 0x3d5   :  { %4630 = vst [vmem:[%s5732_s5 + $0x8] sm:$0xff] %v4626_v8 }
 0x3d6   :  { %4635 = vsyncpa [#allocation3], 1 }
 0x3d7   :  { %4636 = vsyncpa [#allocation5], 1 }
 0x3d8   :  { %4637 = vsyncpa [#allocation8], 1 }

</bundles_post_ra>
